<compile_context>
chip_gen: v5e
topology: v5e:2x2
jax: 0.10.0
libtpu: 0.0.40
codegen_flags: <defaults>
</compile_context>

<pallas_src>
import math

import jax
import jax.numpy as jnp
from jax import lax
from jax.experimental import pallas as pl
from jax.experimental.pallas import tpu as pltpu

# ---- module-consistent config -------------------------------------------------
INPUT_SIZE = 16
N_LAYERS = 2
DIM_EMB = 32
NHEAD = 4
HEAD_DIM = DIM_EMB // NHEAD
DIM_FF = 64
BATCH = 2
N_CHILDS = 8
EPS = 1e-5  # nn.LayerNorm default

# ---- vector-pack row layout (all 1-D params in one (N_VEC_ROWS, VEC_W) buffer) --
VEC_W = 3 * DIM_EMB                    # 96 >= max(2E, F, E, 1)
R_PROJ_B, R_LNP_G, R_LNP_B = 0, 1, 2
# per-layer rows: [qv_b(64), ob, ln1_g, ln1_b, ff1_b(64), ff2_b, ln2_g, ln2_b]
L_QV_B, L_OB, L_LN1_G, L_LN1_B, L_FF1_B, L_FF2_B, L_LN2_G, L_LN2_B = range(8)
ROWS_PER_LAYER = 8
R_LAYER0 = 3
R_OUT_W = R_LAYER0 + ROWS_PER_LAYER * N_LAYERS   # 19
R_OUT_B = R_OUT_W + 1                            # 20
N_VEC_ROWS = R_OUT_B + 1                         # 21


def _layernorm_fast(h, g, b):
    # var = E[h^2] - mu^2 : the two lane-reductions are independent (XLU-friendlier).
    mu = jnp.mean(h, axis=-1, keepdims=True)
    var = jnp.mean(h * h, axis=-1, keepdims=True) - mu * mu
    return (h - mu) * lax.rsqrt(var + EPS) * g + b


def _layernorm_ref(h, g, b):
    mu = jnp.mean(h, axis=-1, keepdims=True)
    var = jnp.mean((h - mu) ** 2, axis=-1, keepdims=True)
    return (h - mu) * lax.rsqrt(var + EPS) * g + b


# ---- Pallas kernel: full forward for ONE batch element per grid step ------------
def attention_childs_kernel(
    x_ref,        # (1, S, I)
    mask_ref,     # (1, 1, S) additive key mask (0 allowed, -1e9 padded)
    vec_ref,      # (N_VEC_ROWS, VEC_W) packed biases / LN gains / out head
    projw_ref,    # (I, E)       pre-transposed
    wqv_ref,      # (L, E, 2E)   pre-transposed, columns [Q | V] (head-major)
    wk_ref,       # (L, E, E)    raw PyTorch layout (rows = out dims) for Wk @ h^T
    wo_ref,       # (L, E, E)    pre-transposed output projection
    ff1_ref,      # (L, E, F)    pre-transposed
    ff2_ref,      # (L, F, E)    pre-transposed
    y_ref,        # (1, 1, S)
):
    E, F, H, D = DIM_EMB, DIM_FF, NHEAD, HEAD_DIM
    x = x_ref[0]                       # (S, I)
    neg_mask = mask_ref[0]             # (1, S), broadcast over query rows

    # project_layer: Linear -> LayerNorm -> LeakyReLU -> Dropout(eval: identity)
    h = jnp.dot(x, projw_ref[...], preferred_element_type=jnp.float32)
    h = h + vec_ref[R_PROJ_B:R_PROJ_B + 1, :E]
    h = _layernorm_fast(h, vec_ref[R_LNP_G:R_LNP_G + 1, :E],
                        vec_ref[R_LNP_B:R_LNP_B + 1, :E])
    h = jnp.where(h >= 0.0, h, 0.01 * h)         # LeakyReLU(0.01)

    inv_sqrt_d = 1.0 / math.sqrt(D)
    for l in range(N_LAYERS):                    # static unrolled layer loop
        base = R_LAYER0 + ROWS_PER_LAYER * l

        def vrow(r, w, base=base):
            return vec_ref[base + r:base + r + 1, :w]

        # --- multi-head self-attention ---
        # Q|V: one wide lane-dense matmul.  K: produced already transposed from h^T
        # (one small transpose per layer, no per-head K transposes).  K bias omitted:
        # softmax is invariant to the row-constant shift q . b_k.
        qv = jnp.dot(h, wqv_ref[l], preferred_element_type=jnp.float32)   # (S, 2E)
        qv = qv + vrow(L_QV_B, 2 * E)
        kT = jnp.dot(wk_ref[l], h.T, preferred_element_type=jnp.float32)  # (E, S)

        ctx_parts = []
        for hd in range(H):                      # static unroll over 4 heads
            q_h = qv[:, hd * D:(hd + 1) * D]                 # (S, D)
            v_h = qv[:, E + hd * D:E + (hd + 1) * D]          # (S, D)
            kT_h = kT[hd * D:(hd + 1) * D, :]                 # (D, S)
            s = jnp.dot(q_h, kT_h, preferred_element_type=jnp.float32) * inv_sqrt_d
            s = s + neg_mask
            s = s - jnp.max(s, axis=-1, keepdims=True)
            p = jnp.exp(s)
            p = p * pl.reciprocal(jnp.sum(p, axis=-1, keepdims=True), approx=True)
            ctx_parts.append(jnp.dot(p, v_h, preferred_element_type=jnp.float32))
        ctx = jnp.concatenate(ctx_parts, axis=-1)             # (S, E) head-major cols
        attn = jnp.dot(ctx, wo_ref[l], preferred_element_type=jnp.float32)
        attn = attn + vrow(L_OB, E)
        h = _layernorm_fast(h + attn, vrow(L_LN1_G, E), vrow(L_LN1_B, E))

        # --- feed-forward (relu) ---
        ff = jnp.dot(h, ff1_ref[l], preferred_element_type=jnp.float32)
        ff = ff + vrow(L_FF1_B, F)
        ff = jnp.maximum(ff, 0.0)
        ff = jnp.dot(ff, ff2_ref[l], preferred_element_type=jnp.float32)
        ff = ff + vrow(L_FF2_B, E)
        h = _layernorm_fast(h + ff, vrow(L_LN2_G, E), vrow(L_LN2_B, E))

    # output head: (1,E) x (S,E) contracted on E -> lane-oriented (1, S) store
    out_w = vec_ref[R_OUT_W:R_OUT_W + 1, :E]     # (1, E)
    out_b = vec_ref[R_OUT_B:R_OUT_B + 1, 0:1]    # (1, 1)
    y = lax.dot_general(out_w, h, (((1,), (1,)), ((), ())),
                        preferred_element_type=jnp.float32) + out_b
    y_ref[0] = y                                 # (1, S)


# ---- parameter packing (one-time, outside the kernel) --------------------------
def pack_params(p):
    L, E = N_LAYERS, DIM_EMB

    def row(v):
        v = jnp.asarray(v, jnp.float32).reshape(-1)
        return jnp.pad(v, (0, VEC_W - v.shape[0]))

    rows = [row(p["proj_b"]), row(p["lnp_g"]), row(p["lnp_b"])]
    wqv, wk = [], []
    for l in range(L):
        W, b = p["qkv_w"][l], p["qkv_b"][l]                  # (3E, E), (3E,)
        Wq, Wk, Wv = W[:E], W[E:2 * E], W[2 * E:]
        bq, bv = b[:E], b[2 * E:]                            # K bias dropped (softmax-invariant)
        wqv.append(jnp.concatenate([Wq.T, Wv.T], axis=1))    # (E, 2E)
        wk.append(Wk)                                        # (E, E)
        rows += [row(jnp.concatenate([bq, bv])),             # qv bias (64)
                 row(p["ob"][l]), row(p["ln1_g"][l]), row(p["ln1_b"][l]),
                 row(p["ff1_b"][l]), row(p["ff2_b"][l]),
                 row(p["ln2_g"][l]), row(p["ln2_b"][l])]
    rows += [row(p["out_w"]), row(p["out_b"])]
    vec = jnp.stack(rows)                                    # (21, 96)

    return {
        "vec": vec,
        "proj_w_t": jnp.asarray(p["proj_w"]).T,              # (I, E)
        "wqv": jnp.stack(wqv),                               # (L, E, 2E)
        "wk": jnp.stack(wk),                                 # (L, E, E)
        "wo_t": jnp.transpose(p["ow"], (0, 2, 1)),           # (L, E, E)
        "ff1_t": jnp.transpose(p["ff1_w"], (0, 2, 1)),       # (L, E, F)
        "ff2_t": jnp.transpose(p["ff2_w"], (0, 2, 1)),       # (L, F, E)
    }


# ---- wrapper --------------------------------------------------------------------
def attention_childs_forward(x, key_mask, packed):
    B, S, I = x.shape
    if key_mask is None:
        key_mask = jnp.zeros((B, S), dtype=bool)

    x = x.astype(jnp.float32)
    add_mask = jnp.where(key_mask, -1e9, 0.0).astype(jnp.float32).reshape(B, 1, S)

    args = (x, add_mask, packed["vec"], packed["proj_w_t"], packed["wqv"],
            packed["wk"], packed["wo_t"], packed["ff1_t"], packed["ff2_t"])

    # one grid step per batch element ("parallel": both TCs on v7x take work)
    in_specs = [
        pl.BlockSpec((1, S, I), lambda b: (b, 0, 0)),
        pl.BlockSpec((1, 1, S), lambda b: (b, 0, 0)),
    ] + [pl.BlockSpec(a.shape, lambda b, nd=a.ndim: (0,) * nd) for a in args[2:]]

    y = pl.pallas_call(
        attention_childs_kernel,
        out_shape=jax.ShapeDtypeStruct((B, 1, S), jnp.float32),
        grid=(B,),
        in_specs=in_specs,
        out_specs=pl.BlockSpec((1, 1, S), lambda b: (b, 0, 0)),
        compiler_params=pltpu.CompilerParams(dimension_semantics=("parallel",)),
    )(*args)
    return y.reshape(B, S)


# ---- pure-JAX f32 reference (PyTorch-layout params, per-batch math) --------------
def reference_forward(x, key_mask, p):
    B, S, _ = x.shape
    if key_mask is None:
        key_mask = jnp.zeros((B, S), dtype=bool)
    mask = key_mask.astype(jnp.float32)[:, None, :]          # (B, 1, S)
    hp = lax.Precision.HIGHEST

    h = jnp.einsum("bsi,ei->bse", x, p["proj_w"], precision=hp) + p["proj_b"]
    h = _layernorm_ref(h, p["lnp_g"], p["lnp_b"])
    h = jnp.where(h >= 0.0, h, 0.01 * h)

    inv = 1.0 / math.sqrt(HEAD_DIM)
    for l in range(N_LAYERS):
        qkv = jnp.einsum("bse,fe->bsf", h, p["qkv_w"][l], precision=hp) + p["qkv_b"][l]
        q, k, v = (qkv[..., :DIM_EMB], qkv[..., DIM_EMB:2 * DIM_EMB], qkv[..., 2 * DIM_EMB:])
        heads = []
        for hd in range(NHEAD):
            sl = slice(hd * HEAD_DIM, (hd + 1) * HEAD_DIM)
            sc = jnp.einsum("bqd,bkd->bqk", q[..., sl], k[..., sl], precision=hp) * inv
            sc = sc - 1e9 * mask
            sc = sc - jnp.max(sc, axis=-1, keepdims=True)
            pr = jnp.exp(sc)
            pr = pr / jnp.sum(pr, axis=-1, keepdims=True)
            heads.append(jnp.einsum("bqk,bkd->bqd", pr, v[..., sl], precision=hp))
        attn = jnp.concatenate(heads, axis=-1)
        attn = jnp.einsum("bse,fe->bsf", attn, p["ow"][l], precision=hp) + p["ob"][l]
        h = _layernorm_ref(h + attn, p["ln1_g"][l], p["ln1_b"][l])
        ff = jnp.einsum("bse,fe->bsf", h, p["ff1_w"][l], precision=hp) + p["ff1_b"][l]
        ff = jnp.maximum(ff, 0.0)
        ff = jnp.einsum("bsf,ef->bse", ff, p["ff2_w"][l], precision=hp) + p["ff2_b"][l]
        h = _layernorm_ref(h + ff, p["ln2_g"][l], p["ln2_b"][l])

    y = jnp.einsum("bse,oe->bso", h, p["out_w"], precision=hp) + p["out_b"]
    return y[..., 0]


# ---- deterministic PyTorch-layout parameter construction -------------------------
def make_params(key):
    L, E, I, F = N_LAYERS, DIM_EMB, INPUT_SIZE, DIM_FF
    keys = iter(jax.random.split(key, 24))

    def u(shape, fan_in):
        a = 1.0 / math.sqrt(fan_in)
        return jax.random.uniform(next(keys), shape, jnp.float32, -a, a)

    return {
        "proj_w": u((E, I), I), "proj_b": u((E,), I),
        "lnp_g": jnp.ones((E,), jnp.float32), "lnp_b": jnp.zeros((E,), jnp.float32),
        "qkv_w": u((L, 3 * E, E), E), "qkv_b": u((L, 3 * E), E),
        "ow": u((L, E, E), E), "ob": u((L, E), E),
        "ln1_g": jnp.ones((L, E), jnp.float32), "ln1_b": jnp.zeros((L, E), jnp.float32),
        "ff1_w": u((L, F, E), E), "ff1_b": u((L, F), E),
        "ff2_w": u((L, E, F), F), "ff2_b": u((L, E), F),
        "ln2_g": jnp.ones((L, E), jnp.float32), "ln2_b": jnp.zeros((L, E), jnp.float32),
        "out_w": u((1, E), E), "out_b": u((1,), E),
    }


if __name__ == "__main__":
    key = jax.random.PRNGKey(0)
    kx, kp = jax.random.split(key)
    x = jax.random.normal(kx, (BATCH, N_CHILDS, INPUT_SIZE), jnp.float32)
    # mask the last child of batch element 1 to exercise key_padding_mask
    key_mask = jnp.zeros((BATCH, N_CHILDS), dtype=bool).at[1, -1].set(True)
    params = make_params(kp)

    packed = pack_params(params)                    # one-time weight re-layout (HBM side)
    y = attention_childs_forward(x, key_mask, packed)
    y = jax.block_until_ready(y)

    y_ref = reference_forward(x, key_mask, params)
    assert y.shape == (BATCH, N_CHILDS), y.shape
    # kernel matmuls run at DEFAULT (bf16 MXU) precision; reference is HIGHEST f32.
    if not jnp.allclose(y, y_ref, atol=2e-2, rtol=2e-2):
        raise ValueError("Pallas kernel output does not match JAX reference")
    print("KERNEL_OK")
</pallas_src>

<mosaic_0001>
module attributes {stable_mosaic.version = 11 : i64} {
  func.func @attention_childs_kernel(%arg0: i32, %arg1: memref<1x8x16xf32, #tpu.memory_space<vmem>>, %arg2: memref<1x1x8xf32, #tpu.memory_space<vmem>>, %arg3: memref<21x96xf32, #tpu.memory_space<vmem>>, %arg4: memref<16x32xf32, #tpu.memory_space<vmem>>, %arg5: memref<2x32x64xf32, #tpu.memory_space<vmem>>, %arg6: memref<2x32x32xf32, #tpu.memory_space<vmem>>, %arg7: memref<2x32x32xf32, #tpu.memory_space<vmem>>, %arg8: memref<2x32x64xf32, #tpu.memory_space<vmem>>, %arg9: memref<2x64x32xf32, #tpu.memory_space<vmem>>, %arg10: memref<1x1x8xf32, #tpu.memory_space<vmem>>) attributes {dimension_semantics = [#tpu.dimension_semantics<parallel>], iteration_bounds = array<i64: 2>, scalar_prefetch = 0 : i64, scratch_operands = 0 : i64, tpu.core_type = #tpu.core_type<tc>, window_params = [{transform_indices = @transform_0, window_bounds = array<i64: 1, 8, 16>}, {transform_indices = @transform_1, window_bounds = array<i64: 1, 1, 8>}, {pipeline_mode = #tpu.pipeline_mode<synchronous>, transform_indices = @transform_2, window_bounds = array<i64: 21, 96>}, {pipeline_mode = #tpu.pipeline_mode<synchronous>, transform_indices = @transform_3, window_bounds = array<i64: 16, 32>}, {pipeline_mode = #tpu.pipeline_mode<synchronous>, transform_indices = @transform_4, window_bounds = array<i64: 2, 32, 64>}, {pipeline_mode = #tpu.pipeline_mode<synchronous>, transform_indices = @transform_5, window_bounds = array<i64: 2, 32, 32>}, {pipeline_mode = #tpu.pipeline_mode<synchronous>, transform_indices = @transform_6, window_bounds = array<i64: 2, 32, 32>}, {pipeline_mode = #tpu.pipeline_mode<synchronous>, transform_indices = @transform_7, window_bounds = array<i64: 2, 32, 64>}, {pipeline_mode = #tpu.pipeline_mode<synchronous>, transform_indices = @transform_8, window_bounds = array<i64: 2, 64, 32>}, {transform_indices = @transform_9, window_bounds = array<i64: 1, 1, 8>}]} {
    %c0 = arith.constant 0 : index
    %c0_0 = arith.constant 0 : index
    %c0_1 = arith.constant 0 : index
    %0 = vector.load %arg1[%c0, %c0_0, %c0_1] : memref<1x8x16xf32, #tpu.memory_space<vmem>>, vector<1x8x16xf32>
    %1 = vector.shape_cast %0 : vector<1x8x16xf32> to vector<8x16xf32>
    %c0_2 = arith.constant 0 : index
    %c0_3 = arith.constant 0 : index
    %c0_4 = arith.constant 0 : index
    %2 = vector.load %arg2[%c0_2, %c0_3, %c0_4] : memref<1x1x8xf32, #tpu.memory_space<vmem>>, vector<1x1x8xf32>
    %3 = vector.shape_cast %2 : vector<1x1x8xf32> to vector<1x8xf32>
    %c0_5 = arith.constant 0 : index
    %c0_6 = arith.constant 0 : index
    %4 = vector.load %arg4[%c0_5, %c0_6] : memref<16x32xf32, #tpu.memory_space<vmem>>, vector<16x32xf32>
    %cst = arith.constant dense<0.000000e+00> : vector<8x32xf32>
    %5 = tpu.matmul %1, %4, %cst {dimension_numbers = #tpu.dot_dimension_numbers<[1], [0], [0], [1], [0, 0, 1, 1], [], []>} : vector<8x16xf32>, vector<16x32xf32>, vector<8x32xf32> -> vector<8x32xf32>
    %c0_7 = arith.constant 0 : index
    %c0_8 = arith.constant 0 : index
    %6 = vector.load %arg3[%c0_7, %c0_8] : memref<21x96xf32, #tpu.memory_space<vmem>>, vector<1x32xf32>
    %7 = vector.broadcast %6 : vector<1x32xf32> to vector<8x32xf32>
    %8 = arith.addf %5, %7 : vector<8x32xf32>
    %c1 = arith.constant 1 : index
    %c0_9 = arith.constant 0 : index
    %9 = vector.load %arg3[%c1, %c0_9] : memref<21x96xf32, #tpu.memory_space<vmem>>, vector<1x32xf32>
    %c2 = arith.constant 2 : index
    %c0_10 = arith.constant 0 : index
    %10 = vector.load %arg3[%c2, %c0_10] : memref<21x96xf32, #tpu.memory_space<vmem>>, vector<1x32xf32>
    %cst_11 = arith.constant dense<0.000000e+00> : vector<8xf32>
    %11 = vector.multi_reduction <add>, %8, %cst_11 [1] : vector<8x32xf32> to vector<8xf32>
    %12 = vector.shape_cast %11 : vector<8xf32> to vector<8x1xf32>
    %cst_12 = arith.constant 3.200000e+01 : f32
    %13 = vector.broadcast %cst_12 : f32 to vector<8x1xf32>
    %14 = arith.divf %12, %13 : vector<8x1xf32>
    %15 = arith.mulf %8, %8 : vector<8x32xf32>
    %cst_13 = arith.constant dense<0.000000e+00> : vector<8xf32>
    %16 = vector.multi_reduction <add>, %15, %cst_13 [1] : vector<8x32xf32> to vector<8xf32>
    %17 = vector.shape_cast %16 : vector<8xf32> to vector<8x1xf32>
    %cst_14 = arith.constant 3.200000e+01 : f32
    %18 = vector.broadcast %cst_14 : f32 to vector<8x1xf32>
    %19 = arith.divf %17, %18 : vector<8x1xf32>
    %20 = arith.mulf %14, %14 : vector<8x1xf32>
    %21 = arith.subf %19, %20 : vector<8x1xf32>
    %22 = vector.broadcast %14 : vector<8x1xf32> to vector<8x32xf32>
    %23 = arith.subf %8, %22 : vector<8x32xf32>
    %cst_15 = arith.constant 9.99999974E-6 : f32
    %24 = vector.broadcast %cst_15 : f32 to vector<8x1xf32>
    %25 = arith.addf %21, %24 : vector<8x1xf32>
    %26 = math.rsqrt %25 : vector<8x1xf32>
    %27 = vector.broadcast %26 : vector<8x1xf32> to vector<8x32xf32>
    %28 = arith.mulf %23, %27 : vector<8x32xf32>
    %29 = vector.broadcast %9 : vector<1x32xf32> to vector<8x32xf32>
    %30 = arith.mulf %28, %29 : vector<8x32xf32>
    %31 = vector.broadcast %10 : vector<1x32xf32> to vector<8x32xf32>
    %32 = arith.addf %30, %31 : vector<8x32xf32>
    %cst_16 = arith.constant 0.000000e+00 : f32
    %33 = vector.broadcast %cst_16 : f32 to vector<8x32xf32>
    %34 = arith.cmpf oge, %32, %33 : vector<8x32xf32>
    %cst_17 = arith.constant 0.00999999977 : f32
    %35 = vector.broadcast %cst_17 : f32 to vector<8x32xf32>
    %36 = arith.mulf %35, %32 : vector<8x32xf32>
    %37 = arith.select %34, %32, %36 : vector<8x32xi1>, vector<8x32xf32>
    %c0_18 = arith.constant 0 : index
    %c0_19 = arith.constant 0 : index
    %c0_20 = arith.constant 0 : index
    %38 = vector.load %arg5[%c0_18, %c0_19, %c0_20] : memref<2x32x64xf32, #tpu.memory_space<vmem>>, vector<1x32x64xf32>
    %39 = vector.shape_cast %38 : vector<1x32x64xf32> to vector<32x64xf32>
    %cst_21 = arith.constant dense<0.000000e+00> : vector<8x64xf32>
    %40 = tpu.matmul %37, %39, %cst_21 {dimension_numbers = #tpu.dot_dimension_numbers<[1], [0], [0], [1], [0, 0, 1, 1], [], []>} : vector<8x32xf32>, vector<32x64xf32>, vector<8x64xf32> -> vector<8x64xf32>
    %c3 = arith.constant 3 : index
    %c0_22 = arith.constant 0 : index
    %41 = vector.load %arg3[%c3, %c0_22] : memref<21x96xf32, #tpu.memory_space<vmem>>, vector<1x64xf32>
    %42 = vector.broadcast %41 : vector<1x64xf32> to vector<8x64xf32>
    %43 = arith.addf %40, %42 : vector<8x64xf32>
    %c0_23 = arith.constant 0 : index
    %c0_24 = arith.constant 0 : index
    %c0_25 = arith.constant 0 : index
    %44 = vector.load %arg6[%c0_23, %c0_24, %c0_25] : memref<2x32x32xf32, #tpu.memory_space<vmem>>, vector<1x32x32xf32>
    %45 = vector.shape_cast %44 : vector<1x32x32xf32> to vector<32x32xf32>
    %46 = tpu.transpose %37, [1, 0] : vector<8x32xf32> -> vector<32x8xf32>
    %cst_26 = arith.constant dense<0.000000e+00> : vector<32x8xf32>
    %47 = tpu.matmul %45, %46, %cst_26 {dimension_numbers = #tpu.dot_dimension_numbers<[1], [0], [0], [1], [0, 0, 1, 1], [], []>} : vector<32x32xf32>, vector<32x8xf32>, vector<32x8xf32> -> vector<32x8xf32>
    %48 = vector.extract_strided_slice %43 {offsets = [0, 0], sizes = [8, 8], strides = [1, 1]} : vector<8x64xf32> to vector<8x8xf32>
    %49 = vector.extract_strided_slice %43 {offsets = [0, 32], sizes = [8, 8], strides = [1, 1]} : vector<8x64xf32> to vector<8x8xf32>
    %50 = vector.extract_strided_slice %47 {offsets = [0, 0], sizes = [8, 8], strides = [1, 1]} : vector<32x8xf32> to vector<8x8xf32>
    %cst_27 = arith.constant dense<0.000000e+00> : vector<8x8xf32>
    %51 = tpu.matmul %48, %50, %cst_27 {dimension_numbers = #tpu.dot_dimension_numbers<[1], [0], [0], [1], [0, 0, 1, 1], [], []>} : vector<8x8xf32>, vector<8x8xf32>, vector<8x8xf32> -> vector<8x8xf32>
    %cst_28 = arith.constant 0.353553385 : f32
    %52 = vector.broadcast %cst_28 : f32 to vector<8x8xf32>
    %53 = arith.mulf %51, %52 : vector<8x8xf32>
    %54 = vector.broadcast %3 : vector<1x8xf32> to vector<8x8xf32>
    %55 = arith.addf %53, %54 : vector<8x8xf32>
    %cst_29 = arith.constant dense<0xFF800000> : vector<8xf32>
    %56 = vector.multi_reduction <maximumf>, %55, %cst_29 [1] : vector<8x8xf32> to vector<8xf32>
    %57 = vector.shape_cast %56 : vector<8xf32> to vector<8x1xf32>
    %58 = vector.broadcast %57 : vector<8x1xf32> to vector<8x8xf32>
    %59 = arith.subf %55, %58 : vector<8x8xf32>
    %60 = math.exp %59 : vector<8x8xf32>
    %cst_30 = arith.constant dense<0.000000e+00> : vector<8xf32>
    %61 = vector.multi_reduction <add>, %60, %cst_30 [1] : vector<8x8xf32> to vector<8xf32>
    %62 = vector.shape_cast %61 : vector<8xf32> to vector<8x1xf32>
    %63 = tpu.reciprocal %62 {approx = true} : vector<8x1xf32> -> vector<8x1xf32>
    %64 = vector.broadcast %63 : vector<8x1xf32> to vector<8x8xf32>
    %65 = arith.mulf %60, %64 : vector<8x8xf32>
    %cst_31 = arith.constant dense<0.000000e+00> : vector<8x8xf32>
    %66 = tpu.matmul %65, %49, %cst_31 {dimension_numbers = #tpu.dot_dimension_numbers<[1], [0], [0], [1], [0, 0, 1, 1], [], []>} : vector<8x8xf32>, vector<8x8xf32>, vector<8x8xf32> -> vector<8x8xf32>
    %67 = vector.extract_strided_slice %43 {offsets = [0, 8], sizes = [8, 8], strides = [1, 1]} : vector<8x64xf32> to vector<8x8xf32>
    %68 = vector.extract_strided_slice %43 {offsets = [0, 40], sizes = [8, 8], strides = [1, 1]} : vector<8x64xf32> to vector<8x8xf32>
    %69 = vector.extract_strided_slice %47 {offsets = [8, 0], sizes = [8, 8], strides = [1, 1]} : vector<32x8xf32> to vector<8x8xf32>
    %cst_32 = arith.constant dense<0.000000e+00> : vector<8x8xf32>
    %70 = tpu.matmul %67, %69, %cst_32 {dimension_numbers = #tpu.dot_dimension_numbers<[1], [0], [0], [1], [0, 0, 1, 1], [], []>} : vector<8x8xf32>, vector<8x8xf32>, vector<8x8xf32> -> vector<8x8xf32>
    %cst_33 = arith.constant 0.353553385 : f32
    %71 = vector.broadcast %cst_33 : f32 to vector<8x8xf32>
    %72 = arith.mulf %70, %71 : vector<8x8xf32>
    %73 = vector.broadcast %3 : vector<1x8xf32> to vector<8x8xf32>
    %74 = arith.addf %72, %73 : vector<8x8xf32>
    %cst_34 = arith.constant dense<0xFF800000> : vector<8xf32>
    %75 = vector.multi_reduction <maximumf>, %74, %cst_34 [1] : vector<8x8xf32> to vector<8xf32>
    %76 = vector.shape_cast %75 : vector<8xf32> to vector<8x1xf32>
    %77 = vector.broadcast %76 : vector<8x1xf32> to vector<8x8xf32>
    %78 = arith.subf %74, %77 : vector<8x8xf32>
    %79 = math.exp %78 : vector<8x8xf32>
    %cst_35 = arith.constant dense<0.000000e+00> : vector<8xf32>
    %80 = vector.multi_reduction <add>, %79, %cst_35 [1] : vector<8x8xf32> to vector<8xf32>
    %81 = vector.shape_cast %80 : vector<8xf32> to vector<8x1xf32>
    %82 = tpu.reciprocal %81 {approx = true} : vector<8x1xf32> -> vector<8x1xf32>
    %83 = vector.broadcast %82 : vector<8x1xf32> to vector<8x8xf32>
    %84 = arith.mulf %79, %83 : vector<8x8xf32>
    %cst_36 = arith.constant dense<0.000000e+00> : vector<8x8xf32>
    %85 = tpu.matmul %84, %68, %cst_36 {dimension_numbers = #tpu.dot_dimension_numbers<[1], [0], [0], [1], [0, 0, 1, 1], [], []>} : vector<8x8xf32>, vector<8x8xf32>, vector<8x8xf32> -> vector<8x8xf32>
    %86 = vector.extract_strided_slice %43 {offsets = [0, 16], sizes = [8, 8], strides = [1, 1]} : vector<8x64xf32> to vector<8x8xf32>
    %87 = vector.extract_strided_slice %43 {offsets = [0, 48], sizes = [8, 8], strides = [1, 1]} : vector<8x64xf32> to vector<8x8xf32>
    %88 = vector.extract_strided_slice %47 {offsets = [16, 0], sizes = [8, 8], strides = [1, 1]} : vector<32x8xf32> to vector<8x8xf32>
    %cst_37 = arith.constant dense<0.000000e+00> : vector<8x8xf32>
    %89 = tpu.matmul %86, %88, %cst_37 {dimension_numbers = #tpu.dot_dimension_numbers<[1], [0], [0], [1], [0, 0, 1, 1], [], []>} : vector<8x8xf32>, vector<8x8xf32>, vector<8x8xf32> -> vector<8x8xf32>
    %cst_38 = arith.constant 0.353553385 : f32
    %90 = vector.broadcast %cst_38 : f32 to vector<8x8xf32>
    %91 = arith.mulf %89, %90 : vector<8x8xf32>
    %92 = vector.broadcast %3 : vector<1x8xf32> to vector<8x8xf32>
    %93 = arith.addf %91, %92 : vector<8x8xf32>
    %cst_39 = arith.constant dense<0xFF800000> : vector<8xf32>
    %94 = vector.multi_reduction <maximumf>, %93, %cst_39 [1] : vector<8x8xf32> to vector<8xf32>
    %95 = vector.shape_cast %94 : vector<8xf32> to vector<8x1xf32>
    %96 = vector.broadcast %95 : vector<8x1xf32> to vector<8x8xf32>
    %97 = arith.subf %93, %96 : vector<8x8xf32>
    %98 = math.exp %97 : vector<8x8xf32>
    %cst_40 = arith.constant dense<0.000000e+00> : vector<8xf32>
    %99 = vector.multi_reduction <add>, %98, %cst_40 [1] : vector<8x8xf32> to vector<8xf32>
    %100 = vector.shape_cast %99 : vector<8xf32> to vector<8x1xf32>
    %101 = tpu.reciprocal %100 {approx = true} : vector<8x1xf32> -> vector<8x1xf32>
    %102 = vector.broadcast %101 : vector<8x1xf32> to vector<8x8xf32>
    %103 = arith.mulf %98, %102 : vector<8x8xf32>
    %cst_41 = arith.constant dense<0.000000e+00> : vector<8x8xf32>
    %104 = tpu.matmul %103, %87, %cst_41 {dimension_numbers = #tpu.dot_dimension_numbers<[1], [0], [0], [1], [0, 0, 1, 1], [], []>} : vector<8x8xf32>, vector<8x8xf32>, vector<8x8xf32> -> vector<8x8xf32>
    %105 = vector.extract_strided_slice %43 {offsets = [0, 24], sizes = [8, 8], strides = [1, 1]} : vector<8x64xf32> to vector<8x8xf32>
    %106 = vector.extract_strided_slice %43 {offsets = [0, 56], sizes = [8, 8], strides = [1, 1]} : vector<8x64xf32> to vector<8x8xf32>
    %107 = vector.extract_strided_slice %47 {offsets = [24, 0], sizes = [8, 8], strides = [1, 1]} : vector<32x8xf32> to vector<8x8xf32>
    %cst_42 = arith.constant dense<0.000000e+00> : vector<8x8xf32>
    %108 = tpu.matmul %105, %107, %cst_42 {dimension_numbers = #tpu.dot_dimension_numbers<[1], [0], [0], [1], [0, 0, 1, 1], [], []>} : vector<8x8xf32>, vector<8x8xf32>, vector<8x8xf32> -> vector<8x8xf32>
    %cst_43 = arith.constant 0.353553385 : f32
    %109 = vector.broadcast %cst_43 : f32 to vector<8x8xf32>
    %110 = arith.mulf %108, %109 : vector<8x8xf32>
    %111 = vector.broadcast %3 : vector<1x8xf32> to vector<8x8xf32>
    %112 = arith.addf %110, %111 : vector<8x8xf32>
    %cst_44 = arith.constant dense<0xFF800000> : vector<8xf32>
    %113 = vector.multi_reduction <maximumf>, %112, %cst_44 [1] : vector<8x8xf32> to vector<8xf32>
    %114 = vector.shape_cast %113 : vector<8xf32> to vector<8x1xf32>
    %115 = vector.broadcast %114 : vector<8x1xf32> to vector<8x8xf32>
    %116 = arith.subf %112, %115 : vector<8x8xf32>
    %117 = math.exp %116 : vector<8x8xf32>
    %cst_45 = arith.constant dense<0.000000e+00> : vector<8xf32>
    %118 = vector.multi_reduction <add>, %117, %cst_45 [1] : vector<8x8xf32> to vector<8xf32>
    %119 = vector.shape_cast %118 : vector<8xf32> to vector<8x1xf32>
    %120 = tpu.reciprocal %119 {approx = true} : vector<8x1xf32> -> vector<8x1xf32>
    %121 = vector.broadcast %120 : vector<8x1xf32> to vector<8x8xf32>
    %122 = arith.mulf %117, %121 : vector<8x8xf32>
    %cst_46 = arith.constant dense<0.000000e+00> : vector<8x8xf32>
    %123 = tpu.matmul %122, %106, %cst_46 {dimension_numbers = #tpu.dot_dimension_numbers<[1], [0], [0], [1], [0, 0, 1, 1], [], []>} : vector<8x8xf32>, vector<8x8xf32>, vector<8x8xf32> -> vector<8x8xf32>
    %124 = tpu.concatenate %66, %85, %104, %123 in 1 : vector<8x8xf32>, vector<8x8xf32>, vector<8x8xf32>, vector<8x8xf32> -> vector<8x32xf32>
    %c0_47 = arith.constant 0 : index
    %c0_48 = arith.constant 0 : index
    %c0_49 = arith.constant 0 : index
    %125 = vector.load %arg7[%c0_47, %c0_48, %c0_49] : memref<2x32x32xf32, #tpu.memory_space<vmem>>, vector<1x32x32xf32>
    %126 = vector.shape_cast %125 : vector<1x32x32xf32> to vector<32x32xf32>
    %cst_50 = arith.constant dense<0.000000e+00> : vector<8x32xf32>
    %127 = tpu.matmul %124, %126, %cst_50 {dimension_numbers = #tpu.dot_dimension_numbers<[1], [0], [0], [1], [0, 0, 1, 1], [], []>} : vector<8x32xf32>, vector<32x32xf32>, vector<8x32xf32> -> vector<8x32xf32>
    %c4 = arith.constant 4 : index
    %c0_51 = arith.constant 0 : index
    %128 = vector.load %arg3[%c4, %c0_51] : memref<21x96xf32, #tpu.memory_space<vmem>>, vector<1x32xf32>
    %129 = vector.broadcast %128 : vector<1x32xf32> to vector<8x32xf32>
    %130 = arith.addf %127, %129 : vector<8x32xf32>
    %131 = arith.addf %37, %130 : vector<8x32xf32>
    %c5 = arith.constant 5 : index
    %c0_52 = arith.constant 0 : index
    %132 = vector.load %arg3[%c5, %c0_52] : memref<21x96xf32, #tpu.memory_space<vmem>>, vector<1x32xf32>
    %c6 = arith.constant 6 : index
    %c0_53 = arith.constant 0 : index
    %133 = vector.load %arg3[%c6, %c0_53] : memref<21x96xf32, #tpu.memory_space<vmem>>, vector<1x32xf32>
    %cst_54 = arith.constant dense<0.000000e+00> : vector<8xf32>
    %134 = vector.multi_reduction <add>, %131, %cst_54 [1] : vector<8x32xf32> to vector<8xf32>
    %135 = vector.shape_cast %134 : vector<8xf32> to vector<8x1xf32>
    %cst_55 = arith.constant 3.200000e+01 : f32
    %136 = vector.broadcast %cst_55 : f32 to vector<8x1xf32>
    %137 = arith.divf %135, %136 : vector<8x1xf32>
    %138 = arith.mulf %131, %131 : vector<8x32xf32>
    %cst_56 = arith.constant dense<0.000000e+00> : vector<8xf32>
    %139 = vector.multi_reduction <add>, %138, %cst_56 [1] : vector<8x32xf32> to vector<8xf32>
    %140 = vector.shape_cast %139 : vector<8xf32> to vector<8x1xf32>
    %cst_57 = arith.constant 3.200000e+01 : f32
    %141 = vector.broadcast %cst_57 : f32 to vector<8x1xf32>
    %142 = arith.divf %140, %141 : vector<8x1xf32>
    %143 = arith.mulf %137, %137 : vector<8x1xf32>
    %144 = arith.subf %142, %143 : vector<8x1xf32>
    %145 = vector.broadcast %137 : vector<8x1xf32> to vector<8x32xf32>
    %146 = arith.subf %131, %145 : vector<8x32xf32>
    %cst_58 = arith.constant 9.99999974E-6 : f32
    %147 = vector.broadcast %cst_58 : f32 to vector<8x1xf32>
    %148 = arith.addf %144, %147 : vector<8x1xf32>
    %149 = math.rsqrt %148 : vector<8x1xf32>
    %150 = vector.broadcast %149 : vector<8x1xf32> to vector<8x32xf32>
    %151 = arith.mulf %146, %150 : vector<8x32xf32>
    %152 = vector.broadcast %132 : vector<1x32xf32> to vector<8x32xf32>
    %153 = arith.mulf %151, %152 : vector<8x32xf32>
    %154 = vector.broadcast %133 : vector<1x32xf32> to vector<8x32xf32>
    %155 = arith.addf %153, %154 : vector<8x32xf32>
    %c0_59 = arith.constant 0 : index
    %c0_60 = arith.constant 0 : index
    %c0_61 = arith.constant 0 : index
    %156 = vector.load %arg8[%c0_59, %c0_60, %c0_61] : memref<2x32x64xf32, #tpu.memory_space<vmem>>, vector<1x32x64xf32>
    %157 = vector.shape_cast %156 : vector<1x32x64xf32> to vector<32x64xf32>
    %cst_62 = arith.constant dense<0.000000e+00> : vector<8x64xf32>
    %158 = tpu.matmul %155, %157, %cst_62 {dimension_numbers = #tpu.dot_dimension_numbers<[1], [0], [0], [1], [0, 0, 1, 1], [], []>} : vector<8x32xf32>, vector<32x64xf32>, vector<8x64xf32> -> vector<8x64xf32>
    %c7 = arith.constant 7 : index
    %c0_63 = arith.constant 0 : index
    %159 = vector.load %arg3[%c7, %c0_63] : memref<21x96xf32, #tpu.memory_space<vmem>>, vector<1x64xf32>
    %160 = vector.broadcast %159 : vector<1x64xf32> to vector<8x64xf32>
    %161 = arith.addf %158, %160 : vector<8x64xf32>
    %cst_64 = arith.constant 0.000000e+00 : f32
    %162 = vector.broadcast %cst_64 : f32 to vector<8x64xf32>
    %163 = arith.maximumf %161, %162 : vector<8x64xf32>
    %c0_65 = arith.constant 0 : index
    %c0_66 = arith.constant 0 : index
    %c0_67 = arith.constant 0 : index
    %164 = vector.load %arg9[%c0_65, %c0_66, %c0_67] : memref<2x64x32xf32, #tpu.memory_space<vmem>>, vector<1x64x32xf32>
    %165 = vector.shape_cast %164 : vector<1x64x32xf32> to vector<64x32xf32>
    %cst_68 = arith.constant dense<0.000000e+00> : vector<8x32xf32>
    %166 = tpu.matmul %163, %165, %cst_68 {dimension_numbers = #tpu.dot_dimension_numbers<[1], [0], [0], [1], [0, 0, 1, 1], [], []>} : vector<8x64xf32>, vector<64x32xf32>, vector<8x32xf32> -> vector<8x32xf32>
    %c8 = arith.constant 8 : index
    %c0_69 = arith.constant 0 : index
    %167 = vector.load %arg3[%c8, %c0_69] : memref<21x96xf32, #tpu.memory_space<vmem>>, vector<1x32xf32>
    %168 = vector.broadcast %167 : vector<1x32xf32> to vector<8x32xf32>
    %169 = arith.addf %166, %168 : vector<8x32xf32>
    %170 = arith.addf %155, %169 : vector<8x32xf32>
    %c9 = arith.constant 9 : index
    %c0_70 = arith.constant 0 : index
    %171 = vector.load %arg3[%c9, %c0_70] : memref<21x96xf32, #tpu.memory_space<vmem>>, vector<1x32xf32>
    %c10 = arith.constant 10 : index
    %c0_71 = arith.constant 0 : index
    %172 = vector.load %arg3[%c10, %c0_71] : memref<21x96xf32, #tpu.memory_space<vmem>>, vector<1x32xf32>
    %cst_72 = arith.constant dense<0.000000e+00> : vector<8xf32>
    %173 = vector.multi_reduction <add>, %170, %cst_72 [1] : vector<8x32xf32> to vector<8xf32>
    %174 = vector.shape_cast %173 : vector<8xf32> to vector<8x1xf32>
    %cst_73 = arith.constant 3.200000e+01 : f32
    %175 = vector.broadcast %cst_73 : f32 to vector<8x1xf32>
    %176 = arith.divf %174, %175 : vector<8x1xf32>
    %177 = arith.mulf %170, %170 : vector<8x32xf32>
    %cst_74 = arith.constant dense<0.000000e+00> : vector<8xf32>
    %178 = vector.multi_reduction <add>, %177, %cst_74 [1] : vector<8x32xf32> to vector<8xf32>
    %179 = vector.shape_cast %178 : vector<8xf32> to vector<8x1xf32>
    %cst_75 = arith.constant 3.200000e+01 : f32
    %180 = vector.broadcast %cst_75 : f32 to vector<8x1xf32>
    %181 = arith.divf %179, %180 : vector<8x1xf32>
    %182 = arith.mulf %176, %176 : vector<8x1xf32>
    %183 = arith.subf %181, %182 : vector<8x1xf32>
    %184 = vector.broadcast %176 : vector<8x1xf32> to vector<8x32xf32>
    %185 = arith.subf %170, %184 : vector<8x32xf32>
    %cst_76 = arith.constant 9.99999974E-6 : f32
    %186 = vector.broadcast %cst_76 : f32 to vector<8x1xf32>
    %187 = arith.addf %183, %186 : vector<8x1xf32>
    %188 = math.rsqrt %187 : vector<8x1xf32>
    %189 = vector.broadcast %188 : vector<8x1xf32> to vector<8x32xf32>
    %190 = arith.mulf %185, %189 : vector<8x32xf32>
    %191 = vector.broadcast %171 : vector<1x32xf32> to vector<8x32xf32>
    %192 = arith.mulf %190, %191 : vector<8x32xf32>
    %193 = vector.broadcast %172 : vector<1x32xf32> to vector<8x32xf32>
    %194 = arith.addf %192, %193 : vector<8x32xf32>
    %c1_77 = arith.constant 1 : index
    %c0_78 = arith.constant 0 : index
    %c0_79 = arith.constant 0 : index
    %195 = vector.load %arg5[%c1_77, %c0_78, %c0_79] : memref<2x32x64xf32, #tpu.memory_space<vmem>>, vector<1x32x64xf32>
    %196 = vector.shape_cast %195 : vector<1x32x64xf32> to vector<32x64xf32>
    %cst_80 = arith.constant dense<0.000000e+00> : vector<8x64xf32>
    %197 = tpu.matmul %194, %196, %cst_80 {dimension_numbers = #tpu.dot_dimension_numbers<[1], [0], [0], [1], [0, 0, 1, 1], [], []>} : vector<8x32xf32>, vector<32x64xf32>, vector<8x64xf32> -> vector<8x64xf32>
    %c11 = arith.constant 11 : index
    %c0_81 = arith.constant 0 : index
    %198 = vector.load %arg3[%c11, %c0_81] : memref<21x96xf32, #tpu.memory_space<vmem>>, vector<1x64xf32>
    %199 = vector.broadcast %198 : vector<1x64xf32> to vector<8x64xf32>
    %200 = arith.addf %197, %199 : vector<8x64xf32>
    %c1_82 = arith.constant 1 : index
    %c0_83 = arith.constant 0 : index
    %c0_84 = arith.constant 0 : index
    %201 = vector.load %arg6[%c1_82, %c0_83, %c0_84] : memref<2x32x32xf32, #tpu.memory_space<vmem>>, vector<1x32x32xf32>
    %202 = vector.shape_cast %201 : vector<1x32x32xf32> to vector<32x32xf32>
    %203 = tpu.transpose %194, [1, 0] : vector<8x32xf32> -> vector<32x8xf32>
    %cst_85 = arith.constant dense<0.000000e+00> : vector<32x8xf32>
    %204 = tpu.matmul %202, %203, %cst_85 {dimension_numbers = #tpu.dot_dimension_numbers<[1], [0], [0], [1], [0, 0, 1, 1], [], []>} : vector<32x32xf32>, vector<32x8xf32>, vector<32x8xf32> -> vector<32x8xf32>
    %205 = vector.extract_strided_slice %200 {offsets = [0, 0], sizes = [8, 8], strides = [1, 1]} : vector<8x64xf32> to vector<8x8xf32>
    %206 = vector.extract_strided_slice %200 {offsets = [0, 32], sizes = [8, 8], strides = [1, 1]} : vector<8x64xf32> to vector<8x8xf32>
    %207 = vector.extract_strided_slice %204 {offsets = [0, 0], sizes = [8, 8], strides = [1, 1]} : vector<32x8xf32> to vector<8x8xf32>
    %cst_86 = arith.constant dense<0.000000e+00> : vector<8x8xf32>
    %208 = tpu.matmul %205, %207, %cst_86 {dimension_numbers = #tpu.dot_dimension_numbers<[1], [0], [0], [1], [0, 0, 1, 1], [], []>} : vector<8x8xf32>, vector<8x8xf32>, vector<8x8xf32> -> vector<8x8xf32>
    %cst_87 = arith.constant 0.353553385 : f32
    %209 = vector.broadcast %cst_87 : f32 to vector<8x8xf32>
    %210 = arith.mulf %208, %209 : vector<8x8xf32>
    %211 = vector.broadcast %3 : vector<1x8xf32> to vector<8x8xf32>
    %212 = arith.addf %210, %211 : vector<8x8xf32>
    %cst_88 = arith.constant dense<0xFF800000> : vector<8xf32>
    %213 = vector.multi_reduction <maximumf>, %212, %cst_88 [1] : vector<8x8xf32> to vector<8xf32>
    %214 = vector.shape_cast %213 : vector<8xf32> to vector<8x1xf32>
    %215 = vector.broadcast %214 : vector<8x1xf32> to vector<8x8xf32>
    %216 = arith.subf %212, %215 : vector<8x8xf32>
    %217 = math.exp %216 : vector<8x8xf32>
    %cst_89 = arith.constant dense<0.000000e+00> : vector<8xf32>
    %218 = vector.multi_reduction <add>, %217, %cst_89 [1] : vector<8x8xf32> to vector<8xf32>
    %219 = vector.shape_cast %218 : vector<8xf32> to vector<8x1xf32>
    %220 = tpu.reciprocal %219 {approx = true} : vector<8x1xf32> -> vector<8x1xf32>
    %221 = vector.broadcast %220 : vector<8x1xf32> to vector<8x8xf32>
    %222 = arith.mulf %217, %221 : vector<8x8xf32>
    %cst_90 = arith.constant dense<0.000000e+00> : vector<8x8xf32>
    %223 = tpu.matmul %222, %206, %cst_90 {dimension_numbers = #tpu.dot_dimension_numbers<[1], [0], [0], [1], [0, 0, 1, 1], [], []>} : vector<8x8xf32>, vector<8x8xf32>, vector<8x8xf32> -> vector<8x8xf32>
    %224 = vector.extract_strided_slice %200 {offsets = [0, 8], sizes = [8, 8], strides = [1, 1]} : vector<8x64xf32> to vector<8x8xf32>
    %225 = vector.extract_strided_slice %200 {offsets = [0, 40], sizes = [8, 8], strides = [1, 1]} : vector<8x64xf32> to vector<8x8xf32>
    %226 = vector.extract_strided_slice %204 {offsets = [8, 0], sizes = [8, 8], strides = [1, 1]} : vector<32x8xf32> to vector<8x8xf32>
    %cst_91 = arith.constant dense<0.000000e+00> : vector<8x8xf32>
    %227 = tpu.matmul %224, %226, %cst_91 {dimension_numbers = #tpu.dot_dimension_numbers<[1], [0], [0], [1], [0, 0, 1, 1], [], []>} : vector<8x8xf32>, vector<8x8xf32>, vector<8x8xf32> -> vector<8x8xf32>
    %cst_92 = arith.constant 0.353553385 : f32
    %228 = vector.broadcast %cst_92 : f32 to vector<8x8xf32>
    %229 = arith.mulf %227, %228 : vector<8x8xf32>
    %230 = vector.broadcast %3 : vector<1x8xf32> to vector<8x8xf32>
    %231 = arith.addf %229, %230 : vector<8x8xf32>
    %cst_93 = arith.constant dense<0xFF800000> : vector<8xf32>
    %232 = vector.multi_reduction <maximumf>, %231, %cst_93 [1] : vector<8x8xf32> to vector<8xf32>
    %233 = vector.shape_cast %232 : vector<8xf32> to vector<8x1xf32>
    %234 = vector.broadcast %233 : vector<8x1xf32> to vector<8x8xf32>
    %235 = arith.subf %231, %234 : vector<8x8xf32>
    %236 = math.exp %235 : vector<8x8xf32>
    %cst_94 = arith.constant dense<0.000000e+00> : vector<8xf32>
    %237 = vector.multi_reduction <add>, %236, %cst_94 [1] : vector<8x8xf32> to vector<8xf32>
    %238 = vector.shape_cast %237 : vector<8xf32> to vector<8x1xf32>
    %239 = tpu.reciprocal %238 {approx = true} : vector<8x1xf32> -> vector<8x1xf32>
    %240 = vector.broadcast %239 : vector<8x1xf32> to vector<8x8xf32>
    %241 = arith.mulf %236, %240 : vector<8x8xf32>
    %cst_95 = arith.constant dense<0.000000e+00> : vector<8x8xf32>
    %242 = tpu.matmul %241, %225, %cst_95 {dimension_numbers = #tpu.dot_dimension_numbers<[1], [0], [0], [1], [0, 0, 1, 1], [], []>} : vector<8x8xf32>, vector<8x8xf32>, vector<8x8xf32> -> vector<8x8xf32>
    %243 = vector.extract_strided_slice %200 {offsets = [0, 16], sizes = [8, 8], strides = [1, 1]} : vector<8x64xf32> to vector<8x8xf32>
    %244 = vector.extract_strided_slice %200 {offsets = [0, 48], sizes = [8, 8], strides = [1, 1]} : vector<8x64xf32> to vector<8x8xf32>
    %245 = vector.extract_strided_slice %204 {offsets = [16, 0], sizes = [8, 8], strides = [1, 1]} : vector<32x8xf32> to vector<8x8xf32>
    %cst_96 = arith.constant dense<0.000000e+00> : vector<8x8xf32>
    %246 = tpu.matmul %243, %245, %cst_96 {dimension_numbers = #tpu.dot_dimension_numbers<[1], [0], [0], [1], [0, 0, 1, 1], [], []>} : vector<8x8xf32>, vector<8x8xf32>, vector<8x8xf32> -> vector<8x8xf32>
    %cst_97 = arith.constant 0.353553385 : f32
    %247 = vector.broadcast %cst_97 : f32 to vector<8x8xf32>
    %248 = arith.mulf %246, %247 : vector<8x8xf32>
    %249 = vector.broadcast %3 : vector<1x8xf32> to vector<8x8xf32>
    %250 = arith.addf %248, %249 : vector<8x8xf32>
    %cst_98 = arith.constant dense<0xFF800000> : vector<8xf32>
    %251 = vector.multi_reduction <maximumf>, %250, %cst_98 [1] : vector<8x8xf32> to vector<8xf32>
    %252 = vector.shape_cast %251 : vector<8xf32> to vector<8x1xf32>
    %253 = vector.broadcast %252 : vector<8x1xf32> to vector<8x8xf32>
    %254 = arith.subf %250, %253 : vector<8x8xf32>
    %255 = math.exp %254 : vector<8x8xf32>
    %cst_99 = arith.constant dense<0.000000e+00> : vector<8xf32>
    %256 = vector.multi_reduction <add>, %255, %cst_99 [1] : vector<8x8xf32> to vector<8xf32>
    %257 = vector.shape_cast %256 : vector<8xf32> to vector<8x1xf32>
    %258 = tpu.reciprocal %257 {approx = true} : vector<8x1xf32> -> vector<8x1xf32>
    %259 = vector.broadcast %258 : vector<8x1xf32> to vector<8x8xf32>
    %260 = arith.mulf %255, %259 : vector<8x8xf32>
    %cst_100 = arith.constant dense<0.000000e+00> : vector<8x8xf32>
    %261 = tpu.matmul %260, %244, %cst_100 {dimension_numbers = #tpu.dot_dimension_numbers<[1], [0], [0], [1], [0, 0, 1, 1], [], []>} : vector<8x8xf32>, vector<8x8xf32>, vector<8x8xf32> -> vector<8x8xf32>
    %262 = vector.extract_strided_slice %200 {offsets = [0, 24], sizes = [8, 8], strides = [1, 1]} : vector<8x64xf32> to vector<8x8xf32>
    %263 = vector.extract_strided_slice %200 {offsets = [0, 56], sizes = [8, 8], strides = [1, 1]} : vector<8x64xf32> to vector<8x8xf32>
    %264 = vector.extract_strided_slice %204 {offsets = [24, 0], sizes = [8, 8], strides = [1, 1]} : vector<32x8xf32> to vector<8x8xf32>
    %cst_101 = arith.constant dense<0.000000e+00> : vector<8x8xf32>
    %265 = tpu.matmul %262, %264, %cst_101 {dimension_numbers = #tpu.dot_dimension_numbers<[1], [0], [0], [1], [0, 0, 1, 1], [], []>} : vector<8x8xf32>, vector<8x8xf32>, vector<8x8xf32> -> vector<8x8xf32>
    %cst_102 = arith.constant 0.353553385 : f32
    %266 = vector.broadcast %cst_102 : f32 to vector<8x8xf32>
    %267 = arith.mulf %265, %266 : vector<8x8xf32>
    %268 = vector.broadcast %3 : vector<1x8xf32> to vector<8x8xf32>
    %269 = arith.addf %267, %268 : vector<8x8xf32>
    %cst_103 = arith.constant dense<0xFF800000> : vector<8xf32>
    %270 = vector.multi_reduction <maximumf>, %269, %cst_103 [1] : vector<8x8xf32> to vector<8xf32>
    %271 = vector.shape_cast %270 : vector<8xf32> to vector<8x1xf32>
    %272 = vector.broadcast %271 : vector<8x1xf32> to vector<8x8xf32>
    %273 = arith.subf %269, %272 : vector<8x8xf32>
    %274 = math.exp %273 : vector<8x8xf32>
    %cst_104 = arith.constant dense<0.000000e+00> : vector<8xf32>
    %275 = vector.multi_reduction <add>, %274, %cst_104 [1] : vector<8x8xf32> to vector<8xf32>
    %276 = vector.shape_cast %275 : vector<8xf32> to vector<8x1xf32>
    %277 = tpu.reciprocal %276 {approx = true} : vector<8x1xf32> -> vector<8x1xf32>
    %278 = vector.broadcast %277 : vector<8x1xf32> to vector<8x8xf32>
    %279 = arith.mulf %274, %278 : vector<8x8xf32>
    %cst_105 = arith.constant dense<0.000000e+00> : vector<8x8xf32>
    %280 = tpu.matmul %279, %263, %cst_105 {dimension_numbers = #tpu.dot_dimension_numbers<[1], [0], [0], [1], [0, 0, 1, 1], [], []>} : vector<8x8xf32>, vector<8x8xf32>, vector<8x8xf32> -> vector<8x8xf32>
    %281 = tpu.concatenate %223, %242, %261, %280 in 1 : vector<8x8xf32>, vector<8x8xf32>, vector<8x8xf32>, vector<8x8xf32> -> vector<8x32xf32>
    %c1_106 = arith.constant 1 : index
    %c0_107 = arith.constant 0 : index
    %c0_108 = arith.constant 0 : index
    %282 = vector.load %arg7[%c1_106, %c0_107, %c0_108] : memref<2x32x32xf32, #tpu.memory_space<vmem>>, vector<1x32x32xf32>
    %283 = vector.shape_cast %282 : vector<1x32x32xf32> to vector<32x32xf32>
    %cst_109 = arith.constant dense<0.000000e+00> : vector<8x32xf32>
    %284 = tpu.matmul %281, %283, %cst_109 {dimension_numbers = #tpu.dot_dimension_numbers<[1], [0], [0], [1], [0, 0, 1, 1], [], []>} : vector<8x32xf32>, vector<32x32xf32>, vector<8x32xf32> -> vector<8x32xf32>
    %c12 = arith.constant 12 : index
    %c0_110 = arith.constant 0 : index
    %285 = vector.load %arg3[%c12, %c0_110] : memref<21x96xf32, #tpu.memory_space<vmem>>, vector<1x32xf32>
    %286 = vector.broadcast %285 : vector<1x32xf32> to vector<8x32xf32>
    %287 = arith.addf %284, %286 : vector<8x32xf32>
    %288 = arith.addf %194, %287 : vector<8x32xf32>
    %c13 = arith.constant 13 : index
    %c0_111 = arith.constant 0 : index
    %289 = vector.load %arg3[%c13, %c0_111] : memref<21x96xf32, #tpu.memory_space<vmem>>, vector<1x32xf32>
    %c14 = arith.constant 14 : index
    %c0_112 = arith.constant 0 : index
    %290 = vector.load %arg3[%c14, %c0_112] : memref<21x96xf32, #tpu.memory_space<vmem>>, vector<1x32xf32>
    %cst_113 = arith.constant dense<0.000000e+00> : vector<8xf32>
    %291 = vector.multi_reduction <add>, %288, %cst_113 [1] : vector<8x32xf32> to vector<8xf32>
    %292 = vector.shape_cast %291 : vector<8xf32> to vector<8x1xf32>
    %cst_114 = arith.constant 3.200000e+01 : f32
    %293 = vector.broadcast %cst_114 : f32 to vector<8x1xf32>
    %294 = arith.divf %292, %293 : vector<8x1xf32>
    %295 = arith.mulf %288, %288 : vector<8x32xf32>
    %cst_115 = arith.constant dense<0.000000e+00> : vector<8xf32>
    %296 = vector.multi_reduction <add>, %295, %cst_115 [1] : vector<8x32xf32> to vector<8xf32>
    %297 = vector.shape_cast %296 : vector<8xf32> to vector<8x1xf32>
    %cst_116 = arith.constant 3.200000e+01 : f32
    %298 = vector.broadcast %cst_116 : f32 to vector<8x1xf32>
    %299 = arith.divf %297, %298 : vector<8x1xf32>
    %300 = arith.mulf %294, %294 : vector<8x1xf32>
    %301 = arith.subf %299, %300 : vector<8x1xf32>
    %302 = vector.broadcast %294 : vector<8x1xf32> to vector<8x32xf32>
    %303 = arith.subf %288, %302 : vector<8x32xf32>
    %cst_117 = arith.constant 9.99999974E-6 : f32
    %304 = vector.broadcast %cst_117 : f32 to vector<8x1xf32>
    %305 = arith.addf %301, %304 : vector<8x1xf32>
    %306 = math.rsqrt %305 : vector<8x1xf32>
    %307 = vector.broadcast %306 : vector<8x1xf32> to vector<8x32xf32>
    %308 = arith.mulf %303, %307 : vector<8x32xf32>
    %309 = vector.broadcast %289 : vector<1x32xf32> to vector<8x32xf32>
    %310 = arith.mulf %308, %309 : vector<8x32xf32>
    %311 = vector.broadcast %290 : vector<1x32xf32> to vector<8x32xf32>
    %312 = arith.addf %310, %311 : vector<8x32xf32>
    %c1_118 = arith.constant 1 : index
    %c0_119 = arith.constant 0 : index
    %c0_120 = arith.constant 0 : index
    %313 = vector.load %arg8[%c1_118, %c0_119, %c0_120] : memref<2x32x64xf32, #tpu.memory_space<vmem>>, vector<1x32x64xf32>
    %314 = vector.shape_cast %313 : vector<1x32x64xf32> to vector<32x64xf32>
    %cst_121 = arith.constant dense<0.000000e+00> : vector<8x64xf32>
    %315 = tpu.matmul %312, %314, %cst_121 {dimension_numbers = #tpu.dot_dimension_numbers<[1], [0], [0], [1], [0, 0, 1, 1], [], []>} : vector<8x32xf32>, vector<32x64xf32>, vector<8x64xf32> -> vector<8x64xf32>
    %c15 = arith.constant 15 : index
    %c0_122 = arith.constant 0 : index
    %316 = vector.load %arg3[%c15, %c0_122] : memref<21x96xf32, #tpu.memory_space<vmem>>, vector<1x64xf32>
    %317 = vector.broadcast %316 : vector<1x64xf32> to vector<8x64xf32>
    %318 = arith.addf %315, %317 : vector<8x64xf32>
    %cst_123 = arith.constant 0.000000e+00 : f32
    %319 = vector.broadcast %cst_123 : f32 to vector<8x64xf32>
    %320 = arith.maximumf %318, %319 : vector<8x64xf32>
    %c1_124 = arith.constant 1 : index
    %c0_125 = arith.constant 0 : index
    %c0_126 = arith.constant 0 : index
    %321 = vector.load %arg9[%c1_124, %c0_125, %c0_126] : memref<2x64x32xf32, #tpu.memory_space<vmem>>, vector<1x64x32xf32>
    %322 = vector.shape_cast %321 : vector<1x64x32xf32> to vector<64x32xf32>
    %cst_127 = arith.constant dense<0.000000e+00> : vector<8x32xf32>
    %323 = tpu.matmul %320, %322, %cst_127 {dimension_numbers = #tpu.dot_dimension_numbers<[1], [0], [0], [1], [0, 0, 1, 1], [], []>} : vector<8x64xf32>, vector<64x32xf32>, vector<8x32xf32> -> vector<8x32xf32>
    %c16 = arith.constant 16 : index
    %c0_128 = arith.constant 0 : index
    %324 = vector.load %arg3[%c16, %c0_128] : memref<21x96xf32, #tpu.memory_space<vmem>>, vector<1x32xf32>
    %325 = vector.broadcast %324 : vector<1x32xf32> to vector<8x32xf32>
    %326 = arith.addf %323, %325 : vector<8x32xf32>
    %327 = arith.addf %312, %326 : vector<8x32xf32>
    %c17 = arith.constant 17 : index
    %c0_129 = arith.constant 0 : index
    %328 = vector.load %arg3[%c17, %c0_129] : memref<21x96xf32, #tpu.memory_space<vmem>>, vector<1x32xf32>
    %c18 = arith.constant 18 : index
    %c0_130 = arith.constant 0 : index
    %329 = vector.load %arg3[%c18, %c0_130] : memref<21x96xf32, #tpu.memory_space<vmem>>, vector<1x32xf32>
    %cst_131 = arith.constant dense<0.000000e+00> : vector<8xf32>
    %330 = vector.multi_reduction <add>, %327, %cst_131 [1] : vector<8x32xf32> to vector<8xf32>
    %331 = vector.shape_cast %330 : vector<8xf32> to vector<8x1xf32>
    %cst_132 = arith.constant 3.200000e+01 : f32
    %332 = vector.broadcast %cst_132 : f32 to vector<8x1xf32>
    %333 = arith.divf %331, %332 : vector<8x1xf32>
    %334 = arith.mulf %327, %327 : vector<8x32xf32>
    %cst_133 = arith.constant dense<0.000000e+00> : vector<8xf32>
    %335 = vector.multi_reduction <add>, %334, %cst_133 [1] : vector<8x32xf32> to vector<8xf32>
    %336 = vector.shape_cast %335 : vector<8xf32> to vector<8x1xf32>
    %cst_134 = arith.constant 3.200000e+01 : f32
    %337 = vector.broadcast %cst_134 : f32 to vector<8x1xf32>
    %338 = arith.divf %336, %337 : vector<8x1xf32>
    %339 = arith.mulf %333, %333 : vector<8x1xf32>
    %340 = arith.subf %338, %339 : vector<8x1xf32>
    %341 = vector.broadcast %333 : vector<8x1xf32> to vector<8x32xf32>
    %342 = arith.subf %327, %341 : vector<8x32xf32>
    %cst_135 = arith.constant 9.99999974E-6 : f32
    %343 = vector.broadcast %cst_135 : f32 to vector<8x1xf32>
    %344 = arith.addf %340, %343 : vector<8x1xf32>
    %345 = math.rsqrt %344 : vector<8x1xf32>
    %346 = vector.broadcast %345 : vector<8x1xf32> to vector<8x32xf32>
    %347 = arith.mulf %342, %346 : vector<8x32xf32>
    %348 = vector.broadcast %328 : vector<1x32xf32> to vector<8x32xf32>
    %349 = arith.mulf %347, %348 : vector<8x32xf32>
    %350 = vector.broadcast %329 : vector<1x32xf32> to vector<8x32xf32>
    %351 = arith.addf %349, %350 : vector<8x32xf32>
    %c19 = arith.constant 19 : index
    %c0_136 = arith.constant 0 : index
    %352 = vector.load %arg3[%c19, %c0_136] : memref<21x96xf32, #tpu.memory_space<vmem>>, vector<1x32xf32>
    %c20 = arith.constant 20 : index
    %c0_137 = arith.constant 0 : index
    %353 = vector.load %arg3[%c20, %c0_137] : memref<21x96xf32, #tpu.memory_space<vmem>>, vector<1x1xf32>
    %cst_138 = arith.constant dense<0.000000e+00> : vector<1x8xf32>
    %354 = tpu.matmul %352, %351, %cst_138 {dimension_numbers = #tpu.dot_dimension_numbers<[1], [1], [0], [0], [0, 0, 1, 0], [], []>} : vector<1x32xf32>, vector<8x32xf32>, vector<1x8xf32> -> vector<1x8xf32>
    %355 = vector.broadcast %353 : vector<1x1xf32> to vector<1x8xf32>
    %356 = arith.addf %354, %355 : vector<1x8xf32>
    %c0_139 = arith.constant 0 : index
    %c0_140 = arith.constant 0 : index
    %c0_141 = arith.constant 0 : index
    %357 = vector.load %arg10[%c0_139, %c0_140, %c0_141] : memref<1x1x8xf32, #tpu.memory_space<vmem>>, vector<1x1x8xf32>
    %358 = vector.shape_cast %357 : vector<1x1x8xf32> to vector<1x8xf32>
    %359 = vector.shape_cast %356 : vector<1x8xf32> to vector<1x1x8xf32>
    tpu.vector_store %arg10[%c0_139, %c0_140, %c0_141], %359 {strides = array<i32>} : memref<1x1x8xf32, #tpu.memory_space<vmem>>, vector<1x1x8xf32>,
    return
  }
  func.func @transform_0(%arg0: i32) -> (i32, i32, i32) {
    %c0_i32 = arith.constant 0 : i32
    %c0_i32_0 = arith.constant 0 : i32
    %c0_i32_1 = arith.constant 0 : i32
    return %arg0, %c0_i32, %c0_i32_0 : i32, i32, i32
  }
  func.func @transform_1(%arg0: i32) -> (i32, i32, i32) {
    %c0_i32 = arith.constant 0 : i32
    %c0_i32_0 = arith.constant 0 : i32
    %c0_i32_1 = arith.constant 0 : i32
    return %arg0, %c0_i32, %c0_i32_0 : i32, i32, i32
  }
  func.func @transform_2(%arg0: i32) -> (i32, i32) {
    %c0_i32 = arith.constant 0 : i32
    %c0_i32_0 = arith.constant 0 : i32
    %c0_i32_1 = arith.constant 0 : i32
    return %c0_i32, %c0_i32_0 : i32, i32
  }
  func.func @transform_3(%arg0: i32) -> (i32, i32) {
    %c0_i32 = arith.constant 0 : i32
    %c0_i32_0 = arith.constant 0 : i32
    %c0_i32_1 = arith.constant 0 : i32
    return %c0_i32, %c0_i32_0 : i32, i32
  }
  func.func @transform_4(%arg0: i32) -> (i32, i32, i32) {
    %c0_i32 = arith.constant 0 : i32
    %c0_i32_0 = arith.constant 0 : i32
    %c0_i32_1 = arith.constant 0 : i32
    %c0_i32_2 = arith.constant 0 : i32
    return %c0_i32, %c0_i32_0, %c0_i32_1 : i32, i32, i32
  }
  func.func @transform_5(%arg0: i32) -> (i32, i32, i32) {
    %c0_i32 = arith.constant 0 : i32
    %c0_i32_0 = arith.constant 0 : i32
    %c0_i32_1 = arith.constant 0 : i32
    %c0_i32_2 = arith.constant 0 : i32
    return %c0_i32, %c0_i32_0, %c0_i32_1 : i32, i32, i32
  }
  func.func @transform_6(%arg0: i32) -> (i32, i32, i32) {
    %c0_i32 = arith.constant 0 : i32
    %c0_i32_0 = arith.constant 0 : i32
    %c0_i32_1 = arith.constant 0 : i32
    %c0_i32_2 = arith.constant 0 : i32
    return %c0_i32, %c0_i32_0, %c0_i32_1 : i32, i32, i32
  }
  func.func @transform_7(%arg0: i32) -> (i32, i32, i32) {
    %c0_i32 = arith.constant 0 : i32
    %c0_i32_0 = arith.constant 0 : i32
    %c0_i32_1 = arith.constant 0 : i32
    %c0_i32_2 = arith.constant 0 : i32
    return %c0_i32, %c0_i32_0, %c0_i32_1 : i32, i32, i32
  }
  func.func @transform_8(%arg0: i32) -> (i32, i32, i32) {
    %c0_i32 = arith.constant 0 : i32
    %c0_i32_0 = arith.constant 0 : i32
    %c0_i32_1 = arith.constant 0 : i32
    %c0_i32_2 = arith.constant 0 : i32
    return %c0_i32, %c0_i32_0, %c0_i32_1 : i32, i32, i32
  }
  func.func @transform_9(%arg0: i32) -> (i32, i32, i32) {
    %c0_i32 = arith.constant 0 : i32
    %c0_i32_0 = arith.constant 0 : i32
    %c0_i32_1 = arith.constant 0 : i32
    return %arg0, %c0_i32, %c0_i32_0 : i32, i32, i32
  }
}

</mosaic_0001>

<bundles_post_ra>
// kernel: tpu_custom_call.1
= control target key start
LH: loop header
LB: loop body
LE: loop exit
PB: predicated region body
PF: predicated region fallthrough
CT: control target
= control target key end

     0   :  { %s2654_s0 = inlined_call_operand.hbm [shape: f32[2,8,16], index: 0, kind: input, shape index: {}]   ;;  %s2655_s1 = inlined_call_operand.hbm [shape: f32[2,1,8], index: 1, kind: input, shape index: {}]   ;;  %s2656_s2 = inlined_call_operand.hbm [shape: f32[21,96], index: 2, kind: input, shape index: {}]   ;;  %s2657_s3 = inlined_call_operand.hbm [shape: f32[16,32], index: 3, kind: input, shape index: {}]   ;;  %s2658_s4 = inlined_call_operand.vmem [shape: f32[2,32,64], index: 4, kind: input, shape index: {}]   ;;  %s2659_s5 = inlined_call_operand.vmem [shape: f32[2,32,32], index: 5, kind: input, shape index: {}]   ;;  %s2660_s6 = inlined_call_operand.vmem [shape: f32[2,32,32], index: 6, kind: input, shape index: {}]   ;;  %s2661_s7 = inlined_call_operand.hbm [shape: f32[2,32,64], index: 7, kind: input, shape index: {}]   ;;  %s2662_s8 = inlined_call_operand.vmem [shape: f32[2,64,32], index: 8, kind: input, shape index: {}]   ;;  %s2663_s9 = inlined_call_operand.hbm [shape: f32[2,1,8], index: 9, kind: output, shape index: {}]  }
   0x1   :  { %2669 = sst [smem:[#allocation22_spill]] %s2656_s2 }
   0x2   :  { %2670 = sst [smem:[#allocation23_spill]] %s2657_s3 }
   0x3   :  { %2671 = sst [smem:[#allocation24_spill]] %s2661_s7 }
   0x4   :  { %14 = vsyncpa [#allocation3], 0 }
   0x5   :  { %16 = vsyncpa [#allocation3 + $0x1], 0 }
   0x6   :  { %17 = vsyncpa [#allocation6], 0 }
   0x7   :  { %19 = vsyncpa [#allocation6 + $0x1], 0 }
   0x8   :  { %20 = vsyncpa [#allocation9], 0 }
   0x9   :  { %21 = vsyncpa [#allocation4], 0 }
   0xa   :  { %23 = vsyncpa [#allocation4 + $0x1], 0  ;;  %s2195_s30 = smov 0   ;;  %s2197_s10 = smov 0  }
   0xb   :  { %s2199_s11 = smov 0   ;;  %s2201_s12 = smov 0  }
   0xc LB: > { %2672 = sst [smem:[#allocation17_spill]] %s2122_s11  ;;  %s2219_s16 = sadd.s32 4294967295, %s2126_s12   ;;  %s2126_s12 = sphi %s2201_s12, %s2690_s12   ;;  %s2122_s11 = sphi %s2199_s11, %s2692_s11   ;;  %s2118_s10 = sphi %s2197_s10, %s2694_s10   ;;  %s2114_s30 = sphi %s2195_s30, %s2693_s30  }
   0xd   : > { %2673 = sst [smem:[#allocation18_spill]] %s2126_s12  ;;  %p1665_p0 = scmp.ge.s32.totalorder %s2126_s12, 1 }
   0xe   : > { %s2674_s2 = sld [smem:[#allocation22_spill]]  ;;  %p50_p1 = scmp.eq.s32.totalorder %s2219_s16, 0 }
   0xf   : > { %p259_p2 = scmp.lt.s32.totalorder %s2126_s12, 3  ;;  %s2128_s18 = smov [#allocation7]  }
  0x10   : > { %s272_s19 = sshll.u32 %s2128_s18, 4  ;;  %s2676_s3 = sld [smem:[#allocation23_spill]]  ;;  %s273_s19 = int_to_ptr.vmem [resolvable:$true] %s272_s19 }
  0x11   : > { %p2224_p3 = pnand %p1665_p0, %p259_p2  ;;  %s2678_s7 = sld [smem:[#allocation24_spill]] }
  0x12   : > { %s2129_s27 = smov [#allocation8]   ;;  %s2130_s29 = smov 128  }
  0x13   : > { %p1754_p4 = pneg %p2224_p3  ;;  %s286_s28 = sshll.u32 %s2129_s27, 4  ;;  %s287_s28 = int_to_ptr.vmem [resolvable:$true] %s286_s28 }
  0x14   : > { %s270_s15 = sshll.u32 %s2674_s2, 4  ;;  %s2131_s13 = smov 8   ;;  %s271_s15 = int_to_ptr.hbm [resolvable:$true] %s270_s15 }
  0x15   : > { %p2236_p6 = pnand %p1754_p4, %p50_p1  ;;  %s2132_s14 = smov [#allocation10]  }
  0x16   : > { %s284_s22 = sshll.u32 %s2676_s3, 4  ;;  %s309_s18 = sshll.u32 %s2132_s14, 4  ;;  %s285_s22 = int_to_ptr.hbm [resolvable:$true] %s284_s22  ;;  %s310_s18 = int_to_ptr.vmem [resolvable:$true] %s309_s18 }
  0x17   : > { %s307_s26 = sshll.u32 %s2678_s7, 4  ;;  %s1664_s20 = sadd.s32 4294967294, %s2126_s12   ;;  %s308_s26 = int_to_ptr.hbm [resolvable:$true] %s307_s26 }
  0x18   : > { %1757 = dma.hbm_to_vmem [thread:$0]  (!%p2236_p6), %s271_s15, 384, %s273_s19, [#allocation6], %s2130_s29, %s2130_s29, %s2131_s13  }
  0x19   : > { %1760 = dma.hbm_to_vmem [thread:$0]  (!%p2236_p6), %s285_s22, 256, %s287_s28, [#allocation9], %s2130_s29, %s2130_s29, %s2131_s13  }
  0x1a   : > { %1763 = dma.hbm_to_vmem [thread:$0]  (!%p2236_p6), %s308_s26, 1024, %s310_s18, [#allocation9], %s2130_s29, %s2130_s29, %s2131_s13  }
  0x1b   : > { %s2251_s21 = sadd.s32 1, %s2126_s12   ;;  %s36_s24 = sadd.s32 1, %s2122_s11 }
  0x1c   : > { %2679 = sst [smem:[#allocation19_spill]] %s2251_s21  ;;  %s33_s15 = ssub.s32 %s2126_s12, %s2251_s21 }
  0x1d   : > { %p43_p7 = scmp.ne.s32.totalorder %s2122_s11, %s2118_s10  ;;  %p34_p8 = scmp.eq.s32.totalorder %s33_s15, 0 }
  0x1e   : > { %p44_p9 = scmp.eq.s32.totalorder %s2126_s12, 0  ;;  %p49_p10 = scmp.ne.s32.totalorder %s2118_s10, %s2114_s30 }
  0x1f   : > { %p246_p11 = scmp.eq.s32.totalorder %s2219_s16, 1  ;;  %p252_p2 = scmp.eq.s32.totalorder %s1664_s20, 1 }
  0x20   : > { %s2263_s19 = scalar_select %p34_p8, %s2122_s11, %s36_s24  }
  0x21   : > { %p2265_p12 = por %p44_p9, %p43_p7  ;;  %p2271_p13 = por %p50_p1, %p49_p10 }
  0x22   : > { %2680 = sst [smem:[#allocation20_spill]] %s2263_s19  ;;  %p2275_p0 = por %p246_p11, %p43_p7 }
  0x23   : > { %p1778_p4 = scmp.lt.s32.totalorder %s2126_s12, 2  ;;  %s2281_s26 = sand.u32 1, %s2122_s11  }
  0x24   : > { %p2283_p6 = por %p252_p2, %p49_p10  ;;  %s1670_s28 = sshll.u32 %s2281_s26, 3 }
  0x25   : > { %s1671_s29 = sshll.u32 %s2126_s12, 3  ;;  %s330_s15 = scalar_lea.vmem [#allocation2], %s1670_s28 }
  0x26   : > { %s2684_s27 = scalar_select %p2283_p6, 1, 0 }
  0x27   : > { %s334_s18 = scalar_lea.hbm %s2654_s0, %s1671_s29  ;;  %s338_s2 = sshll.u32 %s330_s15, 4  ;;  %s339_s2 = int_to_ptr.vmem [resolvable:$true] %s338_s2 }
  0x28   : > { %2685 = sst [smem:[#allocation21_spill]] %s2684_s27  ;;  %s336_s24 = sshll.u32 %s334_s18, 4  ;;  %s337_s24 = int_to_ptr.hbm [resolvable:$true] %s336_s24 }
  0x29   : > { %p2294_p7 = pnand %p1778_p4, %p2265_p12  ;;  %s345_s3 = sand.u32 1, %s2126_s12  }
  0x2a   : > { %s351_s11 = scalar_lea.hbm %s2655_s1, %s2126_s12  ;;  %s327_s21 = scalar_lea.sflag [#allocation3], %s2281_s26 }
  0x2b   : > { %s1988_s13 = sshra.s32 %s337_s24, 4  ;;  %p1992_p9 = pneg %p2294_p7  ;;  %s1989_s13 = int_to_ptr.hbm [resolvable:$true] %s1988_s13 }
  0x2c   : > { %s1990_s29 = scalar_lea.hbm %s1989_s13, 8  ;;  %s1995_s14 = scalar_lea.hbm %s2654_s0, 16 }
  0x2d   : > { %p1991_p8 = scmp.ne.s32.totalorder %s1989_s13, %s1990_s29  ;;  %p1996_p12 = scmp.lt.s32.totalorder %s1989_s13, %s2654_s0 }
  0x2e   : > { %p1997_p2 = scmp.lt.s32.totalorder %s1995_s14, %s1990_s29 }
  0x2f   : > { %p1993_p10 = pnand %p1992_p9, %p1991_p8 }
  0x30   : > { %p1998_p4 = por %p1997_p2, %p1996_p12 }
  0x31   : > { %p1994_p11 = pneg %p1993_p10 }
  0x33   : > { %p1999_p5 = pnand %p1998_p4, %p1994_p11 }
  0x35   : > { %2002 = shalt.err (!%p1999_p5)
}
  0x36   : > { %1767 = dma.hbm_to_vmem [thread:$0]  (!%p2294_p7), %s337_s24, 128, %s339_s2, %s327_s21  }
  0x37   : > { %s353_s7 = sshll.u32 %s351_s11, 4  ;;  %s348_s19 = scalar_lea.vmem [#allocation5], %s2281_s26  ;;  %s354_s7 = int_to_ptr.hbm [resolvable:$true] %s353_s7 }
  0x38   : > { %s355_s12 = sshll.u32 %s348_s19, 4  ;;  %s346_s22 = scalar_lea.sflag [#allocation6], %s345_s3  ;;  %s356_s12 = int_to_ptr.vmem [resolvable:$true] %s355_s12 }
  0x39   : > { %s2018_s28 = sshra.s32 %s354_s7, 4  ;;  %s2025_s14 = scalar_lea.hbm %s2655_s1, 2  ;;  %s2019_s28 = int_to_ptr.hbm [resolvable:$true] %s2018_s28 }
  0x3a   : > { %s2020_s27 = scalar_lea.hbm %s2019_s28, 1  ;;  %p2026_p5 = scmp.lt.s32.totalorder %s2019_s28, %s2655_s1 }
  0x3b   : > { %p2021_p8 = scmp.ne.s32.totalorder %s2019_s28, %s2020_s27  ;;  %p2027_p12 = scmp.lt.s32.totalorder %s2025_s14, %s2020_s27 }
  0x3d   : > { %p2023_p10 = pnand %p2021_p8, %p1992_p9  ;;  %p2028_p2 = por %p2027_p12, %p2026_p5 }
  0x3f   : > { %p2024_p11 = pneg %p2023_p10 }
  0x41   : > { %p2029_p4 = pnand %p2028_p2, %p2024_p11 }
  0x43   : > { %2032 = shalt.err (!%p2029_p4)
}
  0x44   : > { %1770 = dma.hbm_to_vmem [thread:$0]  (!%p2294_p7), %s354_s7, 16, %s356_s12, %s346_s22  }
  0x45   : > { %364 = sbr.rel (%p2224_p3) target bundleno = 4440 (0x1158), region = 56  ;;  %s2332_s3 = sand.u32 (!%p2224_p3), 1, %s2118_s10  }
  0x46   : > { %s1673_s11 = sshll.u32 (!%p2224_p3), %s2332_s3, 3  ;;  %s367_s21 = scalar_lea.sflag (!%p2224_p3), [#allocation3], %s2332_s3 }
  0x47   : > { %s370_s26 = scalar_lea.vmem (!%p2224_p3), [#allocation2], %s1673_s11 }
  0x4a   : > { %2093 = dma.done.wait (%p2271_p13), %s367_s21, 128  }
  0x4b   : > { %2095 = vsyncadd (%p2271_p13), %s367_s21, 4294967168  ;;  %s376_s12 = sand.u32 1, %s2219_s16   ;;  %s379_s27 = scalar_lea.vmem [#allocation5], %s2332_s3 }
  0x4c   : > { %s377_s17 = scalar_lea.sflag [#allocation6], %s376_s12 }
  0x4d   : > { %2097 = dma.done.wait (%p2271_p13), %s377_s17, 16  }
  0x4e   : > { %2099 = vsyncadd (%p2271_p13), %s377_s17, 4294967280 }
  0x4f   : > { %2101 = dma.done.wait (%p50_p1), [#allocation6], 384  }
  0x50   : > { %2103 = vsyncadd (%p50_p1), [#allocation6], 4294966912 }
  0x51   : > { %2105 = dma.done.wait (%p50_p1), [#allocation9], 1280  }
  0x52   : > { %2107 = vsyncadd (%p50_p1), [#allocation9], 4294966016  ;;  %v436_v0 = vld [vmem:[#allocation8 + $0x8] sm:$0xff]  ;;  %v435_v1 = vld [vmem:[#allocation8] sm:$0xff]  ;;  %vm439_vm0 = vcmask 130048   ;;  %vm465_vm1 = vcmask 261120  }
  0x53   : > { %457 = vmatpush.msra.mxu0 %v436_v0  ;;  %v433_v2 = vld [vmem:[%s370_s26] sm:$0xff]  ;;  %v1834_v3 = vld [vmem:[#allocation7] ss:$0 sm:$0xff]  ;;  %v2133_v9 = vmov 32.0   ;;  %v507_v16 = vld [vmem:[%s2658_s4 + $0x18] sm:$0xff]  ;;  %s2134_s2 = smov 88  }
  0x54   : > { %1854 = vrcp.f32 %v2133_v9  ;;  %v506_v17 = vld [vmem:[%s2658_s4 + $0x10] sm:$0xff]  ;;  %525 = vmatpush.msra.mxu1 %v507_v16  ;;  %v505_v19 = vld [vmem:[%s2658_s4 + $0x8] sm:$0xff]  ;;  %v504_v20 = vld [vmem:[%s2658_s4] sm:$0xff]  ;;  %s2135_s11 = smov 120   ;;  %vm578_vm7 = vcmask 64512   ;;  %s2136_s12 = smov 96  }
  0x55   : > { %458 = vmatpush.msra.mxu0 %v435_v1  ;;  %v1835_v34 = vld [vmem:[#allocation7 + $0x1] ss:$0 sm:$0xff]  ;;  %v1836_v37 = vld [vmem:[#allocation7 + $0x2] ss:$0 sm:$0xff]  ;;  %v533_v42 = vld [vmem:[%s2659_s5] sm:$0xff]  ;;  %s2137_s17 = smov 112  }
  0x56   : > { %1677 = vmatmul.msk.f32.vlgmr.msra.gmra.mxu0 %vm439_vm0, %v433_v2  ;;  %526 = vmatpush.msra.mxu1 %v506_v17  ;;  %v534_v43 = vld [vmem:[%s2659_s5 + $0x8] sm:$0xff]  ;;  %v1837_v44 = vld [vmem:[#allocation7 + $0x3] ss:$0 sm:$0xff]  ;;  %v2398_v51 = vld [vmem:[%s379_s27] ss:$0 sm:$0xff]  ;;  %s2138_s24 = smov 104  }
  0x57   : > { %v535_v56 = vld [vmem:[%s2659_s5 + $0x10] sm:$0xff]  ;;  %v536_v2 = vld [vmem:[%s2659_s5 + $0x18] sm:$0xff]  ;;  %s2139_s20 = smov 80   ;;  %s2140_s15 = smov 72   ;;  %vm847_vm8 = vcmask 195584   ;;  %vm949_vm12 = vcmask 523264  }
  0x58   : > { %527 = vmatpush.msra.mxu1 %v505_v19  ;;  %s2141_s7 = smov 8   ;;  %s2142_s19 = smov 16  }
  0x59   : > { %s2143_s22 = smov 24   ;;  %s1539_s21 = scalar_lea.sflag [#allocation4], %s2332_s3 }
  0x5a   : > { %v1855_v10 = vpop.eup %1854  ;;  %528 = vmatpush.msra.mxu1 %v504_v20 }
  0x5b   : > { %v470_v11 = vmul.f32 32.0, %v1855_v10  ;;  %vm474_vm2 = vweird.f32 %v1855_v10 }
  0x5d   : > { %v471_v12 = vsub.f32 1.0, %v470_v11 }
  0x5f   : > { %v472_v13 = vmul.f32 %v1855_v10, %v471_v12 }
  0x61   : > { %v473_v14 = vadd.f32 %v1855_v10, %v472_v13 }
  0x63   : > { %v2363_v18 = vsel %vm474_vm2, %v1855_v10, %v473_v14 }
  0xd3   : > { %v460_v4 = vpop.f32.mrf.mxu0 }
  0xd4   : > { %v461_v5 = vadd.f32 %v1834_v3, %v460_v4 }
  0xd6   : > { %v466_v6 = vsel %vm465_vm1, %v461_v5, 0.0  ;;  %v477_v7 = vmul.f32 %v461_v5, %v461_v5 }
  0xd7   : > { %467 = vadd.xlane.f32.xlu0 %v466_v6 }
  0xd8   : > { %v478_v8 = vsel %vm465_vm1, %v477_v7, 0.0 }
  0xdf   : > { %479 = vadd.xlane.f32.xlu0 %v478_v8 }
 0x14a   : > { %v468_v15 = vpop.xlane.xlu0 %467 }
 0x14b   : > { %v476_v21 = vmul.f32 %v2363_v18, %v468_v15 }
 0x14d   : > { %v482_v23 = vmul.f32 %v476_v21, %v476_v21  ;;  %v484_v33 = vsub.f32 %v461_v5, %v476_v21 }
 0x152   : > { %v480_v22 = vpop.xlane.xlu0 %479 }
 0x153   : > { %v481_v24 = vmul.f32 %v480_v22, %v2363_v18 }
 0x155   : > { %v483_v25 = vsub.f32 %v481_v24, %v482_v23 }
 0x157   : > { %v485_v26 = vadd.f32 1e-05, %v483_v25 }
 0x159   : > { %1856 = vrsqrt.f32 %v485_v26  ;;  %vm492_vm4 = vweird.f32 %v485_v26 }
 0x15f   : > { %v1857_v27 = vpop.eup %1856 }
 0x160   : > { %v487_v28 = vmul.f32 %v1857_v27, %v485_v26  ;;  %vm493_vm3 = vweird.f32 %v1857_v27 }
 0x161   : > { %vm494_vm5 = vmor %vm492_vm4, %vm493_vm3 }
 0x162   : > { %v488_v29 = vmul.f32 %v1857_v27, %v487_v28 }
 0x164   : > { %v489_v30 = vmul.f32 0.5, %v488_v29 }
 0x166   : > { %v490_v31 = vsub.f32 1.5, %v489_v30 }
 0x168   : > { %v491_v32 = vmul.f32 %v1857_v27, %v490_v31 }
 0x16a   : > { %v495_v35 = vsel %vm494_vm5, %v1857_v27, %v491_v32 }
 0x16b   : > { %v496_v36 = vmul.f32 %v495_v35, %v484_v33 }
 0x16d   : > { %v498_v38 = vmul.f32 %v1835_v34, %v496_v36 }
 0x16f   : > { %v500_v39 = vadd.f32 %v1836_v37, %v498_v38 }
 0x171   : > { %vm501_vm6 = vcmp.ge.f32.partialorder %v500_v39, 0.0  ;;  %v502_v40 = vmul.f32 0.01, %v500_v39 }
 0x173   : > { %v2373_v41 = vsel %vm501_vm6, %v500_v39, %v502_v40 }
 0x174   : > { %1678 = vmatmul.msk.f32.vlgmr.msra.gmra.mxu1 %vm465_vm1, %v2373_v41  ;;  %1679 = vmatpush.xpose.msk.msra.mxu2 %vm465_vm1, %v2373_v41 }
 0x177   : > { %1680 = vmatmul.msk.f32.vlgmr.msra.gmra.mxu2 %vm465_vm1, %v533_v42 }
 0x17f   : > { %1681 = vmatmul.msk.f32.gmra.mxu2 %vm465_vm1, %v534_v43 }
 0x187   : > { %1682 = vmatmul.msk.f32.gmra.mxu2 %vm465_vm1, %v535_v56 }
 0x18f   : > { %1683 = vmatmul.msk.f32.gmra.mxu2 %vm465_vm1, %v536_v2 }
 0x1f1   : > { %v530_v45 = vpop.f32.mrf.mxu1 }
 0x1f2   : > { %v2387_v46 = vadd.f32 %v1837_v44, %v530_v45 }
 0x1f4   : > { %681 = vrot.lane.b32.xlu0 %v2387_v46, %s2134_s2  ;;  %644 = vrot.lane.b32.xlu1 %v2387_v46, %s2135_s11 }
 0x1fa   : > { %v566_v47 = vpop.f32.mrf.mxu2 }
 0x1fb   : > { %597 = vmatpush.msra.mxu3 %v566_v47 }
 0x1fc   : > { %1684 = vmatmul.msk.f32.vlgmr.msra.gmra.mxu3 %vm578_vm7, %v2387_v46 }
 0x202   : > { %v569_v48 = vpop.f32.mrf.mxu2 }
 0x203   : > { %663 = vmatpush.msrb.mxu0 %v569_v48 }
 0x20a   : > { %v572_v9 = vpop.f32.mrf.mxu2 }
 0x212   : > { %v575_v14 = vpop.f32.mrf.mxu2 }
 0x266   : > { %v682_v49 = vpop.permute.xlu0 %681  ;;  %v645_v50 = vpop.permute.xlu1 %644 }
 0x267   : > { %1686 = vmatmul.msk.f32.vlgmr.msrb.gmra.mxu0 %vm578_vm7, %v645_v50  ;;  %702 = vmatpush.msrb.mxu1 %v682_v49 }
 0x269   : > { %789 = vmatpush.msra.mxu1 %v575_v14 }
 0x27f   : > { %v599_v52 = vpop.f32.mrf.mxu3 }
 0x280   : > { %v602_v53 = vmul.f32 0.35355338, %v599_v52  ;;  %v852_v52 = vld [vmem:[%s2660_s6 + $0x18] sm:$0xff] }
 0x282   : > { %v606_v54 = vadd.f32 %v2398_v51, %v602_v53  ;;  %v851_v53 = vld [vmem:[%s2660_s6 + $0x10] sm:$0xff] }
 0x284   : > { %v607_v55 = vsel %vm578_vm7, %v606_v54, -inf }
 0x285   : > { %608 = vmax.xlane.f32.xlu1 %v607_v55  ;;  %v849_v55 = vld [vmem:[%s2660_s6] sm:$0xff] }
 0x2e4   : > { %v665_v57 = vpop.f32.mrf.mxu0 }
 0x2e5   : > { %v668_v58 = vmul.f32 0.35355338, %v665_v57 }
 0x2e7   : > { %v669_v59 = vadd.f32 %v2398_v51, %v668_v58 }
 0x2e9   : > { %v670_v60 = vsel %vm578_vm7, %v669_v59, -inf }
 0x2ea   : > { %671 = vmax.xlane.f32.xlu2 %v670_v60 }
 0x2f8   : > { %v609_v61 = vpop.xlane.xlu1 %608 }
 0x2f9   : > { %v610_v62 = vsub.f32 %v606_v54, %v609_v61  ;;  %v850_v54 = vld [vmem:[%s2660_s6 + $0x8] sm:$0xff] }
 0x2fb   : > { %v611_v63 = vmul.f32 1.442695, %v610_v62  ;;  %v1839_v62 = vld [vmem:[#allocation7 + $0x4] ss:$0 sm:$0xff] }
 0x2fd   : > { %1858 = vpow2.f32 %v611_v63 }
 0x302   : > { %618 = vrot.lane.b32.xlu2 %v2387_v46, %s2136_s12 }
 0x303   : > { %v1859_v0 = vpop.eup %1858 }
 0x304   : > { %v613_v1 = vsel %vm578_vm7, %v1859_v0, 0.0 }
 0x32b   : > { %614 = vadd.xlane.f32.xlu2 %v613_v1 }
 0x343   : > { %707 = vrot.lane.b32.xlu2 %v2387_v46, %s2137_s17 }
 0x35d   : > { %v672_v3 = vpop.xlane.xlu2 %671 }
 0x35e   : > { %v673_v4 = vsub.f32 %v669_v59, %v672_v3 }
 0x360   : > { %v674_v5 = vmul.f32 1.442695, %v673_v4 }
 0x362   : > { %1860 = vpow2.f32 %v674_v5  ;;  %v912_v5 = vld [vmem:[#allocation10 + $0x18] sm:$0xff] }
 0x365   : > { %v619_v6 = vpop.permute.xlu2 %618 }
 0x366   : > { %639 = vmatpush.msrb.mxu3 %v619_v6  ;;  %v911_v6 = vld [vmem:[#allocation10 + $0x10] sm:$0xff] }
 0x368   : > { %v1861_v7 = vpop.eup %1860  ;;  %726 = vmatpush.msra.mxu3 %v572_v9 }
 0x369   : > { %v676_v8 = vsel %vm578_vm7, %v1861_v7, 0.0 }
 0x36a   : > { %677 = vadd.xlane.f32.xlu0 %v676_v8  ;;  %v909_v8 = vld [vmem:[#allocation10] sm:$0xff] }
 0x37e   : > { %770 = vrot.lane.b32.xlu0 %v2387_v46, %s2138_s24 }
 0x39e   : > { %v615_v10 = vpop.xlane.xlu2 %614 }
 0x39f   : > { %1862 = vrcp.f32 %v615_v10 }
 0x3a5   : > { %v1863_v11 = vpop.eup %1862 }
 0x3a6   : > { %v617_v12 = vmul.f32 %v1863_v11, %v1859_v0  ;;  %v708_v13 = vpop.permute.xlu2 %707  ;;  %v945_v11 = vld [vmem:[%s2662_s8 + $0x30] sm:$0xff] }
 0x3a8   : > { %1685 = vmatmul.msk.f32.vlgmr.msrb.gmra.mxu3 %vm578_vm7, %v617_v12 }
 0x3b0   : > { %1688 = vmatmul.msk.f32.vlgmr.msra.gmra.mxu3 %vm578_vm7, %v708_v13 }
 0x3dd   : > { %v678_v15 = vpop.xlane.xlu0 %677 }
 0x3de   : > { %1864 = vrcp.f32 %v678_v15  ;;  %v944_v15 = vld [vmem:[%s2662_s8 + $0x28] sm:$0xff] }
 0x3e4   : > { %v1865_v16 = vpop.eup %1864 }
 0x3e5   : > { %v680_v17 = vmul.f32 %v1865_v16, %v1861_v7  ;;  %v910_v7 = vld [vmem:[#allocation10 + $0x8] sm:$0xff] }
 0x3e7   : > { %1687 = vmatmul.msk.f32.vlgmr.msrb.gmra.mxu1 %vm578_vm7, %v680_v17  ;;  %v943_v17 = vld [vmem:[%s2662_s8 + $0x20] sm:$0xff] }
 0x3e8   : > { %930 = vmatpush.msrb.mxu1 %v912_v5 }
 0x3ea   : > { %931 = vmatpush.msrb.mxu1 %v911_v6 }
 0x3ec   : > { %932 = vmatpush.msrb.mxu1 %v910_v7  ;;  %v1845_v7 = vld [vmem:[#allocation7 + $0xa] ss:$0 sm:$0xff] }
 0x3ee   : > { %933 = vmatpush.msrb.mxu1 %v909_v8 }
 0x3f0   : > { %v771_v19 = vpop.permute.xlu0 %770 }
 0x3f1   : > { %1690 = vmatmul.msk.f32.vlgmr.msra.gmra.mxu1 %vm578_vm7, %v771_v19 }
 0x42b   : > { %v2424_v20 = vpop.f32.mrf.mxu3 }
 0x433   : > { %v728_v21 = vpop.f32.mrf.mxu3 }
 0x434   : > { %v731_v22 = vmul.f32 0.35355338, %v728_v21 }
 0x436   : > { %v732_v23 = vadd.f32 %v2398_v51, %v731_v22 }
 0x438   : > { %v733_v24 = vsel %vm578_vm7, %v732_v23, -inf }
 0x439   : > { %734 = vmax.xlane.f32.xlu1 %v733_v24 }
 0x464   : > { %v704_v25 = vpop.f32.mrf.mxu1 }
 0x46e   : > { %v791_v26 = vpop.f32.mrf.mxu1 }
 0x46f   : > { %v794_v27 = vmul.f32 0.35355338, %v791_v26 }
 0x471   : > { %v795_v28 = vadd.f32 %v2398_v51, %v794_v27 }
 0x473   : > { %v796_v29 = vsel %vm578_vm7, %v795_v28, -inf }
 0x474   : > { %797 = vmax.xlane.f32.xlu2 %v796_v29 }
 0x48c   : > { %744 = vrot.lane.b32.xlu2 %v2387_v46, %s2139_s20 }
 0x4ac   : > { %v735_v30 = vpop.xlane.xlu1 %734 }
 0x4ad   : > { %v736_v31 = vsub.f32 %v732_v23, %v735_v30 }
 0x4af   : > { %v737_v32 = vmul.f32 1.442695, %v736_v31  ;;  %v1841_v31 = vld [vmem:[#allocation7 + $0x6] ss:$0 sm:$0xff] }
 0x4b1   : > { %1866 = vpow2.f32 %v737_v32 }
 0x4b7   : > { %v1867_v33 = vpop.eup %1866 }
 0x4b8   : > { %v739_v34 = vsel %vm578_vm7, %v1867_v33, 0.0 }
 0x4b9   : > { %740 = vadd.xlane.f32.xlu1 %v739_v34  ;;  %v941_v34 = vld [vmem:[%s2662_s8 + $0x10] sm:$0xff] }
 0x4d2   : > { %807 = vrot.lane.b32.xlu1 %v2387_v46, %s2140_s15 }
 0x4da   : > { %834 = vrot.lane.b32.xlu1 %v704_v25, %s2141_s7 }
 0x4e7   : > { %v798_v35 = vpop.xlane.xlu2 %797 }
 0x4e8   : > { %v799_v36 = vsub.f32 %v795_v28, %v798_v35  ;;  %v1840_v28 = vld [vmem:[#allocation7 + $0x5] ss:$0 sm:$0xff]  ;;  %v940_v35 = vld [vmem:[%s2662_s8 + $0x8] sm:$0xff] }
 0x4ea   : > { %v800_v37 = vmul.f32 1.442695, %v799_v36  ;;  %v939_v36 = vld [vmem:[%s2662_s8] sm:$0xff] }
 0x4ec   : > { %1868 = vpow2.f32 %v800_v37  ;;  %v1842_v37 = vld [vmem:[#allocation7 + $0x7] ss:$0 sm:$0xff] }
 0x4ef   : > { %v745_v38 = vpop.permute.xlu2 %744 }
 0x4f0   : > { %765 = vmatpush.msra.mxu0 %v745_v38 }
 0x4f2   : > { %v1869_v39 = vpop.eup %1868  ;;  %870 = vmatpush.msrb.mxu0 %v852_v52  ;;  %v1696_v52 = vld [vmem:[%s2658_s4 + $0x28] sm:$0xff] }
 0x4f3   : > { %v802_v40 = vsel %vm578_vm7, %v1869_v39, 0.0 }
 0x4f4   : > { %803 = vadd.xlane.f32.xlu0 %v802_v40  ;;  %871 = vmatpush.msrb.mxu0 %v851_v53  ;;  %v1695_v53 = vld [vmem:[%s2658_s4 + $0x20] sm:$0xff] }
 0x4f6   : > { %872 = vmatpush.msrb.mxu0 %v850_v54 }
 0x4f8   : > { %873 = vmatpush.msrb.mxu0 %v849_v55 }
 0x52c   : > { %v741_v42 = vpop.xlane.xlu1 %740 }
 0x52d   : > { %1870 = vrcp.f32 %v741_v42  ;;  %v1843_v42 = vld [vmem:[#allocation7 + $0x8] ss:$0 sm:$0xff] }
 0x533   : > { %v1871_v43 = vpop.eup %1870 }
 0x534   : > { %v743_v44 = vmul.f32 %v1871_v43, %v1867_v33 }
 0x536   : > { %1689 = vmatmul.msk.f32.vlgmr.msra.gmra.mxu0 %vm578_vm7, %v743_v44 }
 0x544   : > { %v808_v45 = vpop.permute.xlu1 %807 }
 0x545   : > { %828 = vmatpush.msrb.mxu3 %v808_v45 }
 0x54c   : > { %v835_v56 = vpop.permute.xlu1 %834 }
 0x54d   : > { %v845_v58 = vsel %vm578_vm7, %v2424_v20, %v835_v56  ;;  %v942_v20 = vld [vmem:[%s2662_s8 + $0x18] sm:$0xff] }
 0x567   : > { %v804_v46 = vpop.xlane.xlu0 %803 }
 0x568   : > { %1872 = vrcp.f32 %v804_v46 }
 0x56e   : > { %v1873_v47 = vpop.eup %1872 }
 0x56f   : > { %v806_v48 = vmul.f32 %v1873_v47, %v1869_v39 }
 0x571   : > { %1691 = vmatmul.msk.f32.vlgmr.msrb.gmra.mxu3 %vm578_vm7, %v806_v48 }
 0x5b3   : > { %v767_v49 = vpop.f32.mrf.mxu0 }
 0x5b4   : > { %838 = vrot.lane.b32.xlu0 %v767_v49, %s2142_s19  ;;  %v1698_v49 = vld [vmem:[%s2658_s4 + $0x38] sm:$0xff] }
 0x5b5   : > { %1026 = vmatpush.msra.mxu3 %v1698_v49 }
 0x5f4   : > { %v830_v50 = vpop.f32.mrf.mxu3 }
 0x5f5   : > { %842 = vrot.lane.b32.xlu1 %v830_v50, %s2143_s22  ;;  %v1697_v50 = vld [vmem:[%s2658_s4 + $0x30] sm:$0xff] }
 0x5f6   : > { %1027 = vmatpush.msra.mxu3 %v1697_v50 }
 0x5f8   : > { %1028 = vmatpush.msra.mxu3 %v1696_v52 }
 0x5fa   : > { %1029 = vmatpush.msra.mxu3 %v1695_v53 }
 0x626   : > { %v839_v57 = vpop.permute.xlu0 %838 }
 0x627   : > { %v846_v59 = vsel %vm439_vm0, %v845_v58, %v839_v57 }
 0x667   : > { %v843_v60 = vpop.permute.xlu1 %842 }
 0x668   : > { %v848_v61 = vsel %vm847_vm8, %v846_v59, %v843_v60 }
 0x669   : > { %1692 = vmatmul.msk.f32.vlgmr.msrb.gmra.mxu0 %vm465_vm1, %v848_v61 }
 0x6e6   : > { %v875_v63 = vpop.f32.mrf.mxu0 }
 0x6e7   : > { %v876_v0 = vadd.f32 %v1839_v62, %v875_v63 }
 0x6e9   : > { %v878_v1 = vadd.f32 %v876_v0, %v2373_v41  ;;  %v946_v41 = vld [vmem:[%s2662_s8 + $0x38] sm:$0xff] }
 0x6ea   : > { %961 = vmatpush.msrb.mxu2 %v946_v41  ;;  %v1701_v41 = vld [vmem:[%s2659_s5 + $0x28] sm:$0xff] }
 0x6eb   : > { %v881_v2 = vsel %vm465_vm1, %v878_v1, 0.0  ;;  %v885_v3 = vmul.f32 %v878_v1, %v878_v1 }
 0x6ec   : > { %882 = vadd.xlane.f32.xlu1 %v881_v2  ;;  %962 = vmatpush.msrb.mxu2 %v945_v11  ;;  %v1846_v11 = vld [vmem:[#allocation7 + $0xb] ss:$0 sm:$0xff] }
 0x6ed   : > { %v886_v4 = vsel %vm465_vm1, %v885_v3, 0.0 }
 0x6ee   : > { %887 = vadd.xlane.f32.xlu2 %v886_v4  ;;  %963 = vmatpush.msrb.mxu2 %v944_v15  ;;  %v1844_v4 = vld [vmem:[#allocation7 + $0x9] ss:$0 sm:$0xff] }
 0x6f0   : > { %964 = vmatpush.msrb.mxu2 %v943_v17 }
 0x6f2   : > { %965 = vmatpush.msrb.mxu2 %v942_v20 }
 0x6f4   : > { %966 = vmatpush.msrb.mxu2 %v941_v34  ;;  %v1703_v34 = vld [vmem:[%s2659_s5 + $0x38] sm:$0xff] }
 0x6f6   : > { %967 = vmatpush.msrb.mxu2 %v940_v35 }
 0x6f8   : > { %968 = vmatpush.msrb.mxu2 %v939_v36 }
 0x75f   : > { %v883_v9 = vpop.xlane.xlu1 %882 }
 0x760   : > { %v884_v10 = vmul.f32 %v883_v9, %v2363_v18 }
 0x761   : > { %v888_v12 = vpop.xlane.xlu2 %887 }
 0x762   : > { %v890_v13 = vmul.f32 %v884_v10, %v884_v10  ;;  %v889_v14 = vmul.f32 %v888_v12, %v2363_v18  ;;  %v892_v27 = vsub.f32 %v878_v1, %v884_v10  ;;  %v1700_v10 = vld [vmem:[%s2659_s5 + $0x20] sm:$0xff] }
 0x764   : > { %v891_v16 = vsub.f32 %v889_v14, %v890_v13 }
 0x766   : > { %v893_v19 = vadd.f32 1e-05, %v891_v16 }
 0x768   : > { %1874 = vrsqrt.f32 %v893_v19  ;;  %vm900_vm10 = vweird.f32 %v893_v19 }
 0x76e   : > { %v1875_v21 = vpop.eup %1874 }
 0x76f   : > { %v895_v22 = vmul.f32 %v1875_v21, %v893_v19  ;;  %vm901_vm9 = vweird.f32 %v1875_v21 }
 0x770   : > { %vm902_vm11 = vmor %vm900_vm10, %vm901_vm9 }
 0x771   : > { %v896_v23 = vmul.f32 %v1875_v21, %v895_v22 }
 0x773   : > { %v897_v24 = vmul.f32 0.5, %v896_v23 }
 0x775   : > { %v898_v25 = vsub.f32 1.5, %v897_v24 }
 0x777   : > { %v899_v26 = vmul.f32 %v1875_v21, %v898_v25 }
 0x779   : > { %v903_v29 = vsel %vm902_vm11, %v1875_v21, %v899_v26  ;;  %v1702_v26 = vld [vmem:[%s2659_s5 + $0x30] sm:$0xff] }
 0x77a   : > { %v904_v30 = vmul.f32 %v903_v29, %v892_v27 }
 0x77c   : > { %v906_v32 = vmul.f32 %v1840_v28, %v904_v30 }
 0x77e   : > { %v908_v33 = vadd.f32 %v1841_v31, %v906_v32 }
 0x780   : > { %1693 = vmatmul.msk.f32.vlgmr.msrb.gmra.mxu1 %vm465_vm1, %v908_v33 }
 0x7fd   : > { %v935_v38 = vpop.f32.mrf.mxu1 }
 0x7fe   : > { %v936_v39 = vadd.f32 %v1842_v37, %v935_v38 }
 0x800   : > { %v938_v40 = vmax.f32 %v936_v39, 0.0 }
 0x802   : > { %1694 = vmatmul.msk.f32.vlgmr.msrb.gmra.mxu2 %vm949_vm12, %v938_v40 }
 0x885   : > { %v970_v43 = vpop.f32.mrf.mxu2 }
 0x886   : > { %v971_v44 = vadd.f32 %v1843_v42, %v970_v43 }
 0x888   : > { %v973_v45 = vadd.f32 %v971_v44, %v908_v33 }
 0x88a   : > { %v976_v46 = vsel %vm465_vm1, %v973_v45, 0.0  ;;  %v980_v47 = vmul.f32 %v973_v45, %v973_v45 }
 0x88b   : > { %977 = vadd.xlane.f32.xlu0 %v976_v46 }
 0x88c   : > { %v981_v48 = vsel %vm465_vm1, %v980_v47, 0.0 }
 0x88d   : > { %982 = vadd.xlane.f32.xlu1 %v981_v48 }
 0x8fe   : > { %v978_v54 = vpop.xlane.xlu0 %977 }
 0x8ff   : > { %v979_v55 = vmul.f32 %v978_v54, %v2363_v18 }
 0x900   : > { %v983_v56 = vpop.xlane.xlu1 %982 }
 0x901   : > { %v985_v57 = vmul.f32 %v979_v55, %v979_v55  ;;  %v984_v58 = vmul.f32 %v983_v56, %v2363_v18  ;;  %v987_v3 = vsub.f32 %v973_v45, %v979_v55 }
 0x903   : > { %v986_v59 = vsub.f32 %v984_v58, %v985_v57 }
 0x905   : > { %v988_v60 = vadd.f32 1e-05, %v986_v59 }
 0x907   : > { %1876 = vrsqrt.f32 %v988_v60  ;;  %vm995_vm14 = vweird.f32 %v988_v60 }
 0x90d   : > { %v1877_v61 = vpop.eup %1876 }
 0x90e   : > { %v990_v62 = vmul.f32 %v1877_v61, %v988_v60  ;;  %vm996_vm13 = vweird.f32 %v1877_v61 }
 0x90f   : > { %vm997_vm15 = vmor %vm995_vm14, %vm996_vm13 }
 0x910   : > { %v991_v63 = vmul.f32 %v1877_v61, %v990_v62 }
 0x912   : > { %v992_v0 = vmul.f32 0.5, %v991_v63 }
 0x914   : > { %v993_v1 = vsub.f32 1.5, %v992_v0 }
 0x916   : > { %v994_v2 = vmul.f32 %v1877_v61, %v993_v1 }
 0x918   : > { %v998_v5 = vsel %vm997_vm15, %v1877_v61, %v994_v2 }
 0x919   : > { %v999_v6 = vmul.f32 %v998_v5, %v987_v3 }
 0x91b   : > { %v1001_v8 = vmul.f32 %v1844_v4, %v999_v6 }
 0x91d   : > { %v2505_v9 = vadd.f32 %v1845_v7, %v1001_v8 }
 0x91f   : > { %1699 = vmatmul.msk.f32.vlgmr.msra.gmra.mxu3 %vm465_vm1, %v2505_v9  ;;  %1704 = vmatpush.xpose.msk.msra.mxu0 %vm465_vm1, %v2505_v9 }
 0x922   : > { %1705 = vmatmul.msk.f32.vlgmr.msra.gmra.mxu0 %vm465_vm1, %v1700_v10 }
 0x92a   : > { %1706 = vmatmul.msk.f32.gmra.mxu0 %vm465_vm1, %v1701_v41 }
 0x932   : > { %1707 = vmatmul.msk.f32.gmra.mxu0 %vm465_vm1, %v1702_v26 }
 0x93a   : > { %1708 = vmatmul.msk.f32.gmra.mxu0 %vm465_vm1, %v1703_v34 }
 0x99f   : > { %v1068_v12 = vpop.f32.mrf.mxu0 }
 0x9a0   : > { %1098 = vmatpush.msra.mxu1 %v1068_v12 }
 0x9a2   : > { %v1031_v13 = vpop.f32.mrf.mxu3 }
 0x9a3   : > { %v2519_v14 = vadd.f32 %v1846_v11, %v1031_v13 }
 0x9a5   : > { %1142 = vrot.lane.b32.xlu2 %v2519_v14, %s2135_s11  ;;  %1709 = vmatmul.msk.f32.vlgmr.msra.gmra.mxu1 %vm578_vm7, %v2519_v14  ;;  %s2068_s11 = scalar_lea.hbm %s2663_s9, 2 }
 0x9a7   : > { %v1071_v15 = vpop.f32.mrf.mxu0 }
 0x9a8   : > { %1161 = vmatpush.msra.mxu2 %v1071_v15 }
 0x9ad   : > { %1205 = vrot.lane.b32.xlu2 %v2519_v14, %s2137_s17 }
 0x9af   : > { %v1074_v43 = vpop.f32.mrf.mxu0 }
 0x9b5   : > { %1268 = vrot.lane.b32.xlu2 %v2519_v14, %s2138_s24 }
 0x9b7   : > { %v1077_v49 = vpop.f32.mrf.mxu0 }
 0x9ff   : > { %v1143_v16 = vpop.permute.xlu2 %1142 }
 0xa00   : > { %1711 = vmatmul.msk.f32.vlgmr.msra.gmra.mxu2 %vm578_vm7, %v1143_v16  ;;  %v1720_v16 = vld [vmem:[%s2660_s6 + $0x38] sm:$0xff] }
 0xa07   : > { %v1206_v44 = vpop.permute.xlu2 %1205 }
 0xa0f   : > { %v1269_v50 = vpop.permute.xlu2 %1268 }
 0xa22   : > { %v1100_v17 = vpop.f32.mrf.mxu1 }
 0xa23   : > { %v1103_v19 = vmul.f32 0.35355338, %v1100_v17  ;;  %v1719_v17 = vld [vmem:[%s2660_s6 + $0x30] sm:$0xff] }
 0xa25   : > { %v1104_v20 = vadd.f32 %v2398_v51, %v1103_v19  ;;  %v1718_v19 = vld [vmem:[%s2660_s6 + $0x28] sm:$0xff] }
 0xa27   : > { %v1105_v21 = vsel %vm578_vm7, %v1104_v20, -inf }
 0xa28   : > { %1106 = vmax.xlane.f32.xlu0 %v1105_v21  ;;  %v1717_v21 = vld [vmem:[%s2660_s6 + $0x20] sm:$0xff] }
 0xa83   : > { %v1163_v22 = vpop.f32.mrf.mxu2 }
 0xa84   : > { %v1166_v23 = vmul.f32 0.35355338, %v1163_v22 }
 0xa86   : > { %v1167_v24 = vadd.f32 %v2398_v51, %v1166_v23 }
 0xa88   : > { %v1168_v25 = vsel %vm578_vm7, %v1167_v24, -inf }
 0xa89   : > { %1169 = vmax.xlane.f32.xlu1 %v1168_v25 }
 0xa9b   : > { %v1107_v27 = vpop.xlane.xlu0 %1106 }
 0xa9c   : > { %v1108_v28 = vsub.f32 %v1104_v20, %v1107_v27 }
 0xa9e   : > { %v1109_v29 = vmul.f32 1.442695, %v1108_v28  ;;  %v1847_v28 = vld [vmem:[#allocation7 + $0xc] ss:$0 sm:$0xff] }
 0xaa0   : > { %1878 = vpow2.f32 %v1109_v29 }
 0xaa6   : > { %v1879_v30 = vpop.eup %1878 }
 0xaa7   : > { %v1111_v31 = vsel %vm578_vm7, %v1879_v30, 0.0 }
 0xaa8   : > { %1112 = vadd.xlane.f32.xlu0 %v1111_v31 }
 0xabc   : > { %1116 = vrot.lane.b32.xlu0 %v2519_v14, %s2136_s12 }
 0xafc   : > { %v1170_v32 = vpop.xlane.xlu1 %1169 }
 0xafd   : > { %v1171_v33 = vsub.f32 %v1167_v24, %v1170_v32 }
 0xaff   : > { %v1172_v35 = vmul.f32 1.442695, %v1171_v33 }
 0xb01   : > { %1880 = vpow2.f32 %v1172_v35  ;;  %v1411_v35 = vld [vmem:[#allocation10 + $0x38] sm:$0xff] }
 0xb07   : > { %v1881_v36 = vpop.eup %1880 }
 0xb08   : > { %v1174_v37 = vsel %vm578_vm7, %v1881_v36, 0.0 }
 0xb09   : > { %1175 = vadd.xlane.f32.xlu1 %v1174_v37  ;;  %v1409_v37 = vld [vmem:[#allocation10 + $0x28] sm:$0xff] }
 0xb1b   : > { %v1113_v38 = vpop.xlane.xlu0 %1112 }
 0xb1c   : > { %1882 = vrcp.f32 %v1113_v38  ;;  %v1408_v38 = vld [vmem:[#allocation10 + $0x20] sm:$0xff] }
 0xb22   : > { %1179 = vrot.lane.b32.xlu1 %v2519_v14, %s2134_s2  ;;  %v1883_v39 = vpop.eup %1882 }
 0xb23   : > { %v1115_v40 = vmul.f32 %v1883_v39, %v1879_v30 }
 0xb2e   : > { %v1117_v42 = vpop.permute.xlu0 %1116 }
 0xb2f   : > { %1137 = vmatpush.msrb.mxu3 %v1117_v42  ;;  %v1729_v42 = vld [vmem:[%s2662_s8 + $0x70] sm:$0xff] }
 0xb30   : > { %1710 = vmatmul.msk.f32.vlgmr.msrb.gmra.mxu3 %vm578_vm7, %v1115_v40 }
 0xb31   : > { %1224 = vmatpush.msra.mxu3 %v1074_v43 }
 0xb38   : > { %1713 = vmatmul.msk.f32.vlgmr.msra.gmra.mxu3 %vm578_vm7, %v1206_v44 }
 0xb7c   : > { %v1176_v45 = vpop.xlane.xlu1 %1175 }
 0xb7d   : > { %1884 = vrcp.f32 %v1176_v45 }
 0xb83   : > { %v1885_v46 = vpop.eup %1884 }
 0xb84   : > { %v1178_v47 = vmul.f32 %v1885_v46, %v1881_v36  ;;  %v1410_v36 = vld [vmem:[#allocation10 + $0x30] sm:$0xff] }
 0xb85   : > { %v1728_v46 = vld [vmem:[%s2662_s8 + $0x68] sm:$0xff] }
 0xb94   : > { %v1180_v48 = vpop.permute.xlu1 %1179 }
 0xb95   : > { %1200 = vmatpush.msrb.mxu1 %v1180_v48  ;;  %v1727_v48 = vld [vmem:[%s2662_s8 + $0x60] sm:$0xff] }
 0xb96   : > { %1712 = vmatmul.msk.f32.vlgmr.msrb.gmra.mxu1 %vm578_vm7, %v1178_v47 }
 0xb97   : > { %1287 = vmatpush.msra.mxu1 %v1077_v49 }
 0xb99   : > { %1429 = vmatpush.msrb.mxu1 %v1411_v35 }
 0xb9b   : > { %1430 = vmatpush.msrb.mxu1 %v1410_v36  ;;  %v1503_v36 = vld [vmem:[#allocation7 + $0x13] sm:$0x1] }
 0xb9d   : > { %1431 = vmatpush.msrb.mxu1 %v1409_v37 }
 0xb9e   : > { %1715 = vmatmul.msk.f32.vlgmr.msra.gmra.mxu1 %vm578_vm7, %v1269_v50  ;;  %v1726_v50 = vld [vmem:[%s2662_s8 + $0x58] sm:$0xff] }
 0xb9f   : > { %1432 = vmatpush.msrb.mxu1 %v1408_v38 }
 0xbb3   : > { %v1139_v52 = vpop.f32.mrf.mxu3 }
 0xbbb   : > { %v1226_v53 = vpop.f32.mrf.mxu3 }
 0xbbc   : > { %v1229_v54 = vmul.f32 0.35355338, %v1226_v53 }
 0xbbe   : > { %v1230_v55 = vadd.f32 %v2398_v51, %v1229_v54 }
 0xbc0   : > { %v1231_v56 = vsel %vm578_vm7, %v1230_v55, -inf }
 0xbc1   : > { %1232 = vmax.xlane.f32.xlu0 %v1231_v56 }
 0xc13   : > { %v1202_v57 = vpop.f32.mrf.mxu1 }
 0xc1b   : > { %v1289_v58 = vpop.f32.mrf.mxu1 }
 0xc1c   : > { %v1292_v59 = vmul.f32 0.35355338, %v1289_v58 }
 0xc1e   : > { %v1293_v60 = vadd.f32 %v2398_v51, %v1292_v59  ;;  %v1848_v59 = vld [vmem:[#allocation7 + $0xd] ss:$0 sm:$0xff] }
 0xc20   : > { %v1294_v61 = vsel %vm578_vm7, %v1293_v60, -inf }
 0xc21   : > { %1295 = vmax.xlane.f32.xlu2 %v1294_v61 }
 0xc34   : > { %v1233_v62 = vpop.xlane.xlu0 %1232 }
 0xc35   : > { %v1234_v63 = vsub.f32 %v1230_v55, %v1233_v62  ;;  %v1849_v62 = vld [vmem:[#allocation7 + $0xe] ss:$0 sm:$0xff] }
 0xc37   : > { %v1235_v0 = vmul.f32 1.442695, %v1234_v63 }
 0xc39   : > { %1886 = vpow2.f32 %v1235_v0  ;;  %1242 = vrot.lane.b32.xlu2 %v2519_v14, %s2139_s20 }
 0xc3f   : > { %v1887_v1 = vpop.eup %1886 }
 0xc40   : > { %v1237_v2 = vsel %vm578_vm7, %v1887_v1, 0.0 }
 0xc41   : > { %1238 = vadd.xlane.f32.xlu1 %v1237_v2  ;;  %v1724_v2 = vld [vmem:[%s2662_s8 + $0x48] sm:$0xff] }
 0xc5a   : > { %1305 = vrot.lane.b32.xlu1 %v2519_v14, %s2140_s15 }
 0xc94   : > { %v1296_v3 = vpop.xlane.xlu2 %1295 }
 0xc95   : > { %v1297_v4 = vsub.f32 %v1293_v60, %v1296_v3  ;;  %v1723_v3 = vld [vmem:[%s2662_s8 + $0x40] sm:$0xff] }
 0xc97   : > { %v1298_v51 = vmul.f32 1.442695, %v1297_v4  ;;  %v1850_v4 = vld [vmem:[#allocation7 + $0xf] ss:$0 sm:$0xff] }
 0xc99   : > { %1888 = vpow2.f32 %v1298_v51 }
 0xc9c   : > { %v1243_v5 = vpop.permute.xlu2 %1242 }
 0xc9d   : > { %1263 = vmatpush.msrb.mxu2 %v1243_v5 }
 0xc9f   : > { %v1889_v6 = vpop.eup %1888  ;;  %1368 = vmatpush.msra.mxu2 %v1720_v16 }
 0xca0   : > { %v1300_v7 = vsel %vm578_vm7, %v1889_v6, 0.0 }
 0xca1   : > { %1301 = vadd.xlane.f32.xlu0 %v1300_v7  ;;  %1369 = vmatpush.msra.mxu2 %v1719_v17  ;;  %v1851_v7 = vld [vmem:[#allocation7 + $0x10] ss:$0 sm:$0xff] }
 0xca3   : > { %1370 = vmatpush.msra.mxu2 %v1718_v19 }
 0xca5   : > { %1371 = vmatpush.msra.mxu2 %v1717_v21 }
 0xcb4   : > { %v1239_v8 = vpop.xlane.xlu1 %1238 }
 0xcb5   : > { %1890 = vrcp.f32 %v1239_v8  ;;  %1332 = vrot.lane.b32.xlu0 %v1202_v57, %s2141_s7 }
 0xcbb   : > { %v1891_v10 = vpop.eup %1890 }
 0xcbc   : > { %v1241_v41 = vmul.f32 %v1891_v10, %v1887_v1  ;;  %v1725_v1 = vld [vmem:[%s2662_s8 + $0x50] sm:$0xff] }
 0xcbe   : > { %1714 = vmatmul.msk.f32.vlgmr.msrb.gmra.mxu2 %vm578_vm7, %v1241_v41 }
 0xccc   : > { %v1306_v11 = vpop.permute.xlu1 %1305 }
 0xccd   : > { %1326 = vmatpush.msrb.mxu3 %v1306_v11 }
 0xd14   : > { %v1302_v12 = vpop.xlane.xlu0 %1301 }
 0xd15   : > { %1892 = vrcp.f32 %v1302_v12 }
 0xd1b   : > { %v1893_v13 = vpop.eup %1892 }
 0xd1c   : > { %v1304_v14 = vmul.f32 %v1893_v13, %v1889_v6 }
 0xd1e   : > { %1716 = vmatmul.msk.f32.vlgmr.msrb.gmra.mxu3 %vm578_vm7, %v1304_v14 }
 0xd27   : > { %v1333_v22 = vpop.permute.xlu0 %1332 }
 0xd28   : > { %v1343_v24 = vsel %vm578_vm7, %v1139_v52, %v1333_v22  ;;  %v2144_v22 = vmov 0   ;;  %vm1536_vm7 = vcmask 57344  }
 0xd29   : > { %1832 = vset.pattern.permute.xlu2 %v2144_v22  ;;  %1833 = vset.pattern.permute.xlu0 %v2144_v22 }
 0xd41   : > { %v1265_v15 = vpop.f32.mrf.mxu2 }
 0xd42   : > { %1336 = vrot.lane.b32.xlu2 %v1265_v15, %s2142_s19  ;;  %s1547_s19 = scalar_lea.hbm %s2663_s9, %s2219_s16 }
 0xd43   : > { %s1551_s18 = sshll.u32 %s1547_s19, 4  ;;  %s1552_s18 = int_to_ptr.hbm [resolvable:$true] %s1551_s18 }
 0xd44   : > { %s2062_s26 = sshra.s32 %s1552_s18, 4  ;;  %s2063_s26 = int_to_ptr.hbm [resolvable:$true] %s2062_s26 }
 0xd45   : > { %s2064_s27 = scalar_lea.hbm %s2063_s26, 1  ;;  %p2069_p7 = scmp.lt.s32.totalorder %s2063_s26, %s2663_s9 }
 0xd46   : > { %p2065_p1 = scmp.ne.s32.totalorder %s2063_s26, %s2064_s27  ;;  %p2070_p9 = scmp.lt.s32.totalorder %s2068_s11, %s2064_s27 }
 0xd48   : > { %p2066_p3 = pnand %p2065_p1, %p2275_p0  ;;  %p2071_p8 = por %p2070_p9, %p2069_p7 }
 0xd4a   : > { %p2067_p13 = pneg %p2066_p3 }
 0xd4c   : > { %p2072_p10 = pnand %p2071_p8, %p2067_p13 }
 0xd9c   : > { %v1337_v23 = vpop.permute.xlu2 %1336 }
 0xd9d   : > { %v1344_v25 = vsel %vm439_vm0, %v1343_v24, %v1337_v23 }
 0xda1   : > { %v1328_v20 = vpop.f32.mrf.mxu3 }
 0xda2   : > { %1340 = vrot.lane.b32.xlu0 %v1328_v20, %s2143_s22  ;;  %v1504_v20 = vld [vmem:[#allocation7 + $0x14] sm:$0x1]  ;;  %s432_s22 = scalar_lea.vmem [#allocation11], %s2332_s3 }
 0xda3   : > { %s1549_s14 = sshll.u32 %s432_s22, 4  ;;  %s1550_s14 = int_to_ptr.vmem [resolvable:$true] %s1549_s14 }
 0xe14   : > { %v1341_v26 = vpop.permute.xlu0 %1340 }
 0xe15   : > { %v1345_v27 = vsel %vm847_vm8, %v1344_v25, %v1341_v26 }
 0xe16   : > { %1721 = vmatmul.msk.f32.vlgmr.msra.gmra.mxu2 %vm465_vm1, %v1345_v27 }
 0xe99   : > { %v1373_v29 = vpop.f32.mrf.mxu2 }
 0xe9a   : > { %v1374_v30 = vadd.f32 %v1847_v28, %v1373_v29 }
 0xe9c   : > { %v1376_v31 = vadd.f32 %v1374_v30, %v2505_v9  ;;  %v1730_v9 = vld [vmem:[%s2662_s8 + $0x78] sm:$0xff] }
 0xe9d   : > { %1460 = vmatpush.msrb.mxu0 %v1730_v9 }
 0xe9e   : > { %v1379_v32 = vsel %vm465_vm1, %v1376_v31, 0.0  ;;  %v1383_v33 = vmul.f32 %v1376_v31, %v1376_v31 }
 0xe9f   : > { %1380 = vadd.xlane.f32.xlu1 %v1379_v32  ;;  %1461 = vmatpush.msrb.mxu0 %v1729_v42 }
 0xea0   : > { %v1384_v34 = vsel %vm465_vm1, %v1383_v33, 0.0  ;;  %v1853_v33 = vld [vmem:[#allocation7 + $0x12] ss:$0 sm:$0xff] }
 0xea1   : > { %1385 = vadd.xlane.f32.xlu2 %v1384_v34  ;;  %1462 = vmatpush.msrb.mxu0 %v1728_v46 }
 0xea3   : > { %1463 = vmatpush.msrb.mxu0 %v1727_v48 }
 0xea5   : > { %1464 = vmatpush.msrb.mxu0 %v1726_v50 }
 0xea7   : > { %1465 = vmatpush.msrb.mxu0 %v1725_v1 }
 0xea9   : > { %1466 = vmatpush.msrb.mxu0 %v1724_v2 }
 0xeab   : > { %1467 = vmatpush.msrb.mxu0 %v1723_v3 }
 0xeb9   : > { %1507 = vperm.xlu2 %1832, %v1504_v20  }
 0xf12   : > { %v1381_v39 = vpop.xlane.xlu1 %1380 }
 0xf13   : > { %v1382_v40 = vmul.f32 %v1381_v39, %v2363_v18 }
 0xf14   : > { %v1386_v43 = vpop.xlane.xlu2 %1385 }
 0xf15   : > { %v1388_v44 = vmul.f32 %v1382_v40, %v1382_v40  ;;  %v1387_v45 = vmul.f32 %v1386_v43, %v2363_v18  ;;  %v1390_v58 = vsub.f32 %v1376_v31, %v1382_v40 }
 0xf17   : > { %v1389_v47 = vsub.f32 %v1387_v45, %v1388_v44 }
 0xf19   : > { %v1391_v49 = vadd.f32 1e-05, %v1389_v47 }
 0xf1b   : > { %1894 = vrsqrt.f32 %v1391_v49  ;;  %vm1398_vm2 = vweird.f32 %v1391_v49 }
 0xf1c   : > { %v1508_v37 = vpop.permute.xlu2 %1507 }
 0xf21   : > { %v1895_v52 = vpop.eup %1894 }
 0xf22   : > { %v1393_v53 = vmul.f32 %v1895_v52, %v1391_v49  ;;  %vm1399_vm0 = vweird.f32 %v1895_v52 }
 0xf23   : > { %vm1400_vm3 = vmor %vm1398_vm2, %vm1399_vm0 }
 0xf24   : > { %v1394_v54 = vmul.f32 %v1895_v52, %v1393_v53 }
 0xf26   : > { %v1395_v55 = vmul.f32 0.5, %v1394_v54 }
 0xf28   : > { %v1396_v56 = vsub.f32 1.5, %v1395_v55 }
 0xf2a   : > { %v1397_v57 = vmul.f32 %v1895_v52, %v1396_v56 }
 0xf2c   : > { %v1401_v60 = vsel %vm1400_vm3, %v1895_v52, %v1397_v57 }
 0xf2d   : > { %v1402_v61 = vmul.f32 %v1401_v60, %v1390_v58 }
 0xf2f   : > { %v1404_v63 = vmul.f32 %v1848_v59, %v1402_v61 }
 0xf31   : > { %v1406_v0 = vadd.f32 %v1849_v62, %v1404_v63 }
 0xf33   : > { %1722 = vmatmul.msk.f32.vlgmr.msrb.gmra.mxu1 %vm465_vm1, %v1406_v0 }
 0xfb0   : > { %v1434_v51 = vpop.f32.mrf.mxu1 }
 0xfb1   : > { %v1435_v5 = vadd.f32 %v1850_v4, %v1434_v51 }
 0xfb3   : > { %v1437_v6 = vmax.f32 %v1435_v5, 0.0 }
 0xfb5   : > { %1731 = vmatmul.msk.f32.vlgmr.msrb.gmra.mxu0 %vm949_vm12, %v1437_v6 }
0x1032   : > { %v1469_v8 = vpop.f32.mrf.mxu0 }
0x1033   : > { %v1470_v10 = vadd.f32 %v1851_v7, %v1469_v8 }
0x1035   : > { %v1472_v41 = vadd.f32 %v1470_v10, %v1406_v0 }
0x1037   : > { %v1475_v11 = vsel %vm465_vm1, %v1472_v41, 0.0  ;;  %v1479_v12 = vmul.f32 %v1472_v41, %v1472_v41 }
0x1038   : > { %1476 = vadd.xlane.f32.xlu0 %v1475_v11 }
0x1039   : > { %v1480_v13 = vsel %vm465_vm1, %v1479_v12, 0.0 }
0x103a   : > { %1481 = vadd.xlane.f32.xlu1 %v1480_v13 }
0x10ab   : > { %v1477_v14 = vpop.xlane.xlu0 %1476 }
0x10ac   : > { %v1478_v15 = vmul.f32 %v1477_v14, %v2363_v18 }
0x10ad   : > { %v1482_v16 = vpop.xlane.xlu1 %1481 }
0x10ae   : > { %v1484_v17 = vmul.f32 %v1478_v15, %v1478_v15  ;;  %v1483_v19 = vmul.f32 %v1482_v16, %v2363_v18  ;;  %v1486_v30 = vsub.f32 %v1472_v41, %v1478_v15  ;;  %v1852_v18 = vld [vmem:[#allocation7 + $0x11] ss:$0 sm:$0xff] }
0x10b0   : > { %v1485_v21 = vsub.f32 %v1483_v19, %v1484_v17 }
0x10b2   : > { %v1487_v23 = vadd.f32 1e-05, %v1485_v21 }
0x10b4   : > { %1896 = vrsqrt.f32 %v1487_v23  ;;  %vm1494_vm5 = vweird.f32 %v1487_v23 }
0x10ba   : > { %v1897_v24 = vpop.eup %1896 }
0x10bb   : > { %v1489_v25 = vmul.f32 %v1897_v24, %v1487_v23  ;;  %vm1495_vm4 = vweird.f32 %v1897_v24 }
0x10bc   : > { %vm1496_vm6 = vmor %vm1494_vm5, %vm1495_vm4 }
0x10bd   : > { %v1490_v26 = vmul.f32 %v1897_v24, %v1489_v25 }
0x10bf   : > { %v1491_v27 = vmul.f32 0.5, %v1490_v26 }
0x10c1   : > { %v1492_v28 = vsub.f32 1.5, %v1491_v27 }
0x10c3   : > { %v1493_v29 = vmul.f32 %v1897_v24, %v1492_v28 }
0x10c5   : > { %v1497_v31 = vsel %vm1496_vm6, %v1897_v24, %v1493_v29 }
0x10c6   : > { %v1498_v32 = vmul.f32 %v1497_v31, %v1486_v30 }
0x10c8   : > { %v1500_v34 = vmul.f32 %v1852_v18, %v1498_v32 }
0x10ca   : > { %v1502_v35 = vadd.f32 %v1853_v33, %v1500_v34 }
0x10cc   : > { %1732 = vmatpush.xpose.msk.msra.mxu3 %vm465_vm1, %v1502_v35 }
0x10cf   : > { %1733 = vmatmul.msk.f32.vlgmr.msra.gmra.mxu3 %vm465_vm1, %v1503_v36 }
0x1152   : > { %v1533_v38 = vpop.f32.mrf.mxu3 }
0x1153   : > { %v1534_v39 = vadd.f32 %v1533_v38, %v1508_v37 }
0x1155   : > { %1537 = vst.msk [vmem:[%s432_s22] sm:$0x1] %vm1536_vm7, %v1534_v39 }
0x1156   : > { %2075 = shalt.err (!%p2072_p10)
}
0x1157   : > { %1752 = dma.vmem_to_hbm [thread:$0]  (%p2275_p0), %s1550_s14, 16, %s1552_s18, %s1539_s21  }
0x1158 PF: > { %s2688_s28 = sld [smem:[#allocation18_spill]]  ;;  %s1563_s2 = sand.u32 1, %s2114_s30  }
0x1159   : > { %s1564_s12 = scalar_lea.sflag [#allocation4], %s1563_s2 }
0x115e   : > { %p2689_p11 = scmp.ge.s32.totalorder %s2688_s28, 2 }
0x1160   : > { %p1772_p5 = pnand %p2689_p11, %p2283_p6 }
0x1162   : > { %p1773_p12 = pneg %p1772_p5 }
0x1164   : > { %2109 = dma.done.wait (%p1773_p12), %s1564_s12, 16  }
0x1165   : > { %2111 = vsyncadd (%p1773_p12), %s1564_s12, 4294967280  ;;  %s2690_s12 = sld [smem:[#allocation19_spill]]  ;;  %s2693_s30 = smov %s2118_s10 }
0x1166   : > { %s2691_s20 = sld [smem:[#allocation17_spill]] }
0x1167   : > { %s2692_s11 = sld [smem:[#allocation20_spill]] }
0x116b   : > { %p26_p2 = scmp.ge.s32.totalorder %s2690_s12, 4  }
0x116c   : > { %s2694_s10 = smov %s2691_s20 }
0x116d   :  { %28 = sbr.rel (!%p26_p2) target bundleno = 12 (0xc), region = 131 }
0x1172   :  { %1569 = vsyncpa [#allocation3], 1 }
0x1173   :  { %1571 = vsyncpa [#allocation3 + $0x1], 1 }
0x1174   :  { %1572 = vsyncpa [#allocation6], 1 }
0x1175   :  { %1574 = vsyncpa [#allocation6 + $0x1], 1 }
0x1176   :  { %1575 = vsyncpa [#allocation9], 1 }
0x1177   :  { %1576 = vsyncpa [#allocation4], 1 }
0x1178   :  { %1578 = vsyncpa [#allocation4 + $0x1], 1 }

</bundles_post_ra>
